<compile_context>
chip_gen: v7x
topology: tpu7x:2x2x1
jax: 0.10.0
libtpu: 0.0.40
codegen_flags: <defaults>
</compile_context>

<pallas_src>
import functools

import jax
import jax.numpy as jnp
from jax.experimental import pallas as pl
from jax.experimental.pallas import tpu as pltpu


# Logical (PyTorch) dims.
D_IN, D_H, D_OUT = 100, 250, 30
# Lane-aligned (padded) dims used inside the kernel.
D_IN_P, D_H_P, D_OUT_P = 128, 256, 128

# 256 fills the v6e/v7x 256x256 MXU; also a clean multiple of the v5e 128-row
# unit.  All tiles still fit easily in the default scoped VMEM on every gen.
BATCH_TILE = 256


def _net100_kernel(x_ref, w1_ref, b1_ref, w2_ref, b2_ref,
                   w3_ref, b3_ref, w4_ref, b4_ref, o_ref):
    # x and all weights arrive as bf16; accumulate in f32 on the MXU,
    # bias-add / relu in f32 on the VPU, re-cast to bf16 for the next matmul.
    x = x_ref[...]

    h = jnp.dot(x, w1_ref[...], preferred_element_type=jnp.float32) + b1_ref[...]
    h = jnp.maximum(h, 0.0).astype(jnp.bfloat16)

    h = jnp.dot(h, w2_ref[...], preferred_element_type=jnp.float32) + b2_ref[...]
    h = jnp.maximum(h, 0.0).astype(jnp.bfloat16)

    h = jnp.dot(h, w3_ref[...], preferred_element_type=jnp.float32) + b3_ref[...]
    h = jnp.maximum(h, 0.0).astype(jnp.bfloat16)

    y = jnp.dot(h, w4_ref[...], preferred_element_type=jnp.float32) + b4_ref[...]
    o_ref[...] = y.astype(o_ref.dtype)


def _pad2(a, rows, cols):
    """Zero-pad a 2-D array up to (rows, cols)."""
    return jnp.pad(a, ((0, rows - a.shape[0]), (0, cols - a.shape[1])))


@jax.jit
def net100_forward(x, params):
    """x: [B, 100] float32 -> [B, 30] float32."""
    w1, b1, w2, b2, w3, b3, w4, b4 = params
    B = x.shape[0]

    # --- host-side padding / casting (cheap, fused by XLA) ------------------
    B_pad = pl.cdiv(B, BATCH_TILE) * BATCH_TILE
    x_p = jnp.pad(x, ((0, B_pad - B), (0, D_IN_P - D_IN))).astype(jnp.bfloat16)

    w1_p = _pad2(w1, D_IN_P, D_H_P).astype(jnp.bfloat16)
    w2_p = _pad2(w2, D_H_P, D_H_P).astype(jnp.bfloat16)
    w3_p = _pad2(w3, D_H_P, D_H_P).astype(jnp.bfloat16)
    w4_p = _pad2(w4, D_H_P, D_OUT_P).astype(jnp.bfloat16)
    b1_p = _pad2(b1, 1, D_H_P)       # biases stay f32
    b2_p = _pad2(b2, 1, D_H_P)
    b3_p = _pad2(b3, 1, D_H_P)
    b4_p = _pad2(b4, 1, D_OUT_P)

    grid = (B_pad // BATCH_TILE,)

    # Weights/biases use a constant index_map -> resident across the batch grid.
    def full_spec(shape):
        return pl.BlockSpec(shape, lambda i: (0, 0))

    out_p = pl.pallas_call(
        _net100_kernel,
        out_shape=jax.ShapeDtypeStruct((B_pad, D_OUT_P), jnp.float32),
        grid_spec=pltpu.PrefetchScalarGridSpec(
            num_scalar_prefetch=0,
            grid=grid,
            in_specs=[
                pl.BlockSpec((BATCH_TILE, D_IN_P), lambda i: (i, 0)),  # x tile
                full_spec((D_IN_P, D_H_P)),    # w1
                full_spec((1, D_H_P)),         # b1
                full_spec((D_H_P, D_H_P)),     # w2
                full_spec((1, D_H_P)),         # b2
                full_spec((D_H_P, D_H_P)),     # w3
                full_spec((1, D_H_P)),         # b3
                full_spec((D_H_P, D_OUT_P)),   # w4
                full_spec((1, D_OUT_P)),       # b4
            ],
            out_specs=pl.BlockSpec((BATCH_TILE, D_OUT_P), lambda i: (i, 0)),
        ),
        compiler_params=pltpu.CompilerParams(
            dimension_semantics=("parallel",),
        ),
    )(x_p, w1_p, b1_p, w2_p, b2_p, w3_p, b3_p, w4_p, b4_p)

    # Strip batch and feature padding.
    return out_p[:B, :D_OUT]


def init_params(key):
    """PyTorch-style nn.Linear init: U(-1/sqrt(fan_in), 1/sqrt(fan_in))."""
    def linear(key, fan_in, fan_out):
        kw, kb = jax.random.split(key)
        bound = 1.0 / jnp.sqrt(jnp.float32(fan_in))
        # stored as [in, out] (transposed vs PyTorch's [out, in])
        w = jax.random.uniform(kw, (fan_in, fan_out), jnp.float32, -bound, bound)
        b = jax.random.uniform(kb, (1, fan_out), jnp.float32, -bound, bound)
        return w, b

    k1, k2, k3, k4 = jax.random.split(key, 4)
    w1, b1 = linear(k1, D_IN, D_H)
    w2, b2 = linear(k2, D_H, D_H)
    w3, b3 = linear(k3, D_H, D_H)
    w4, b4 = linear(k4, D_H, D_OUT)
    return (w1, b1, w2, b2, w3, b3, w4, b4)


def _reference_bf16(x, params):
    """Same math as the kernel (bf16 matmul inputs, f32 accumulation)."""
    w1, b1, w2, b2, w3, b3, w4, b4 = params
    h = x.astype(jnp.bfloat16)
    h = jnp.dot(h, w1.astype(jnp.bfloat16), preferred_element_type=jnp.float32) + b1
    h = jnp.maximum(h, 0.0).astype(jnp.bfloat16)
    h = jnp.dot(h, w2.astype(jnp.bfloat16), preferred_element_type=jnp.float32) + b2
    h = jnp.maximum(h, 0.0).astype(jnp.bfloat16)
    h = jnp.dot(h, w3.astype(jnp.bfloat16), preferred_element_type=jnp.float32) + b3
    h = jnp.maximum(h, 0.0).astype(jnp.bfloat16)
    return jnp.dot(h, w4.astype(jnp.bfloat16), preferred_element_type=jnp.float32) + b4


def _reference_f32(x, params):
    w1, b1, w2, b2, w3, b3, w4, b4 = params
    h = jnp.maximum(x @ w1 + b1, 0.0)
    h = jnp.maximum(h @ w2 + b2, 0.0)
    h = jnp.maximum(h @ w3 + b3, 0.0)
    return h @ w4 + b4


if __name__ == "__main__":
    key = jax.random.PRNGKey(0)
    kx, kp = jax.random.split(key)

    B = 4  # small batch; wrapper pads to the 256-row tile internally
    x = jax.random.normal(kx, (B, D_IN), jnp.float32)
    params = init_params(kp)

    out = net100_forward(x, params)
    out = jax.block_until_ready(out)
    assert out.shape == (B, D_OUT)

    # Exact-path check: JAX reference using the same bf16-input / f32-acc math.
    ref_bf16 = _reference_bf16(x, params)
    assert jnp.allclose(out, ref_bf16, atol=1e-2, rtol=1e-2), \
        "mismatch vs bf16-path reference"

    # Fidelity report vs the full-f32 PyTorch-equivalent forward (informational).
    ref_f32 = _reference_f32(x, params)
    _ = float(jnp.max(jnp.abs(out - ref_f32)))  # small (~1e-2), bf16 rounding

    print("KERNEL_OK")
</pallas_src>

<mosaic_0001>
module attributes {stable_mosaic.version = 11 : i64} {
  func.func @_net100_kernel(%arg0: i32, %arg1: memref<256x128xbf16, #tpu.memory_space<vmem>>, %arg2: memref<128x256xbf16, #tpu.memory_space<vmem>>, %arg3: memref<1x256xf32, #tpu.memory_space<vmem>>, %arg4: memref<256x256xbf16, #tpu.memory_space<vmem>>, %arg5: memref<1x256xf32, #tpu.memory_space<vmem>>, %arg6: memref<256x256xbf16, #tpu.memory_space<vmem>>, %arg7: memref<1x256xf32, #tpu.memory_space<vmem>>, %arg8: memref<256x128xbf16, #tpu.memory_space<vmem>>, %arg9: memref<1x128xf32, #tpu.memory_space<vmem>>, %arg10: memref<256x128xf32, #tpu.memory_space<vmem>>) attributes {dimension_semantics = [#tpu.dimension_semantics<parallel>], iteration_bounds = array<i64: 1>, scalar_prefetch = 0 : i64, scratch_operands = 0 : i64, tpu.core_type = #tpu.core_type<tc>, window_params = [{transform_indices = @transform_0, window_bounds = array<i64: 256, 128>}, {pipeline_mode = #tpu.pipeline_mode<synchronous>, transform_indices = @transform_1, window_bounds = array<i64: 128, 256>}, {pipeline_mode = #tpu.pipeline_mode<synchronous>, transform_indices = @transform_2, window_bounds = array<i64: 1, 256>}, {pipeline_mode = #tpu.pipeline_mode<synchronous>, transform_indices = @transform_3, window_bounds = array<i64: 256, 256>}, {pipeline_mode = #tpu.pipeline_mode<synchronous>, transform_indices = @transform_4, window_bounds = array<i64: 1, 256>}, {pipeline_mode = #tpu.pipeline_mode<synchronous>, transform_indices = @transform_5, window_bounds = array<i64: 256, 256>}, {pipeline_mode = #tpu.pipeline_mode<synchronous>, transform_indices = @transform_6, window_bounds = array<i64: 1, 256>}, {pipeline_mode = #tpu.pipeline_mode<synchronous>, transform_indices = @transform_7, window_bounds = array<i64: 256, 128>}, {pipeline_mode = #tpu.pipeline_mode<synchronous>, transform_indices = @transform_8, window_bounds = array<i64: 1, 128>}, {transform_indices = @transform_9, window_bounds = array<i64: 256, 128>}]} {
    %c0 = arith.constant 0 : index
    %c0_0 = arith.constant 0 : index
    %0 = vector.load %arg1[%c0, %c0_0] : memref<256x128xbf16, #tpu.memory_space<vmem>>, vector<256x128xbf16>
    %c0_1 = arith.constant 0 : index
    %c0_2 = arith.constant 0 : index
    %1 = vector.load %arg2[%c0_1, %c0_2] : memref<128x256xbf16, #tpu.memory_space<vmem>>, vector<128x256xbf16>
    %cst = arith.constant dense<0.000000e+00> : vector<256x256xf32>
    %2 = tpu.matmul %0, %1, %cst {dimension_numbers = #tpu.dot_dimension_numbers<[1], [0], [0], [1], [0, 0, 1, 1], [], []>} : vector<256x128xbf16>, vector<128x256xbf16>, vector<256x256xf32> -> vector<256x256xf32>
    %c0_3 = arith.constant 0 : index
    %c0_4 = arith.constant 0 : index
    %3 = vector.load %arg3[%c0_3, %c0_4] : memref<1x256xf32, #tpu.memory_space<vmem>>, vector<1x256xf32>
    %4 = vector.broadcast %3 : vector<1x256xf32> to vector<256x256xf32>
    %5 = arith.addf %2, %4 : vector<256x256xf32>
    %cst_5 = arith.constant 0.000000e+00 : f32
    %6 = vector.broadcast %cst_5 : f32 to vector<256x256xf32>
    %7 = arith.maximumf %5, %6 : vector<256x256xf32>
    %8 = arith.truncf %7 : vector<256x256xf32> to vector<256x256xbf16>
    %c0_6 = arith.constant 0 : index
    %c0_7 = arith.constant 0 : index
    %9 = vector.load %arg4[%c0_6, %c0_7] : memref<256x256xbf16, #tpu.memory_space<vmem>>, vector<256x256xbf16>
    %cst_8 = arith.constant dense<0.000000e+00> : vector<256x256xf32>
    %10 = tpu.matmul %8, %9, %cst_8 {dimension_numbers = #tpu.dot_dimension_numbers<[1], [0], [0], [1], [0, 0, 1, 1], [], []>} : vector<256x256xbf16>, vector<256x256xbf16>, vector<256x256xf32> -> vector<256x256xf32>
    %c0_9 = arith.constant 0 : index
    %c0_10 = arith.constant 0 : index
    %11 = vector.load %arg5[%c0_9, %c0_10] : memref<1x256xf32, #tpu.memory_space<vmem>>, vector<1x256xf32>
    %12 = vector.broadcast %11 : vector<1x256xf32> to vector<256x256xf32>
    %13 = arith.addf %10, %12 : vector<256x256xf32>
    %cst_11 = arith.constant 0.000000e+00 : f32
    %14 = vector.broadcast %cst_11 : f32 to vector<256x256xf32>
    %15 = arith.maximumf %13, %14 : vector<256x256xf32>
    %16 = arith.truncf %15 : vector<256x256xf32> to vector<256x256xbf16>
    %c0_12 = arith.constant 0 : index
    %c0_13 = arith.constant 0 : index
    %17 = vector.load %arg6[%c0_12, %c0_13] : memref<256x256xbf16, #tpu.memory_space<vmem>>, vector<256x256xbf16>
    %cst_14 = arith.constant dense<0.000000e+00> : vector<256x256xf32>
    %18 = tpu.matmul %16, %17, %cst_14 {dimension_numbers = #tpu.dot_dimension_numbers<[1], [0], [0], [1], [0, 0, 1, 1], [], []>} : vector<256x256xbf16>, vector<256x256xbf16>, vector<256x256xf32> -> vector<256x256xf32>
    %c0_15 = arith.constant 0 : index
    %c0_16 = arith.constant 0 : index
    %19 = vector.load %arg7[%c0_15, %c0_16] : memref<1x256xf32, #tpu.memory_space<vmem>>, vector<1x256xf32>
    %20 = vector.broadcast %19 : vector<1x256xf32> to vector<256x256xf32>
    %21 = arith.addf %18, %20 : vector<256x256xf32>
    %cst_17 = arith.constant 0.000000e+00 : f32
    %22 = vector.broadcast %cst_17 : f32 to vector<256x256xf32>
    %23 = arith.maximumf %21, %22 : vector<256x256xf32>
    %24 = arith.truncf %23 : vector<256x256xf32> to vector<256x256xbf16>
    %c0_18 = arith.constant 0 : index
    %c0_19 = arith.constant 0 : index
    %25 = vector.load %arg8[%c0_18, %c0_19] : memref<256x128xbf16, #tpu.memory_space<vmem>>, vector<256x128xbf16>
    %cst_20 = arith.constant dense<0.000000e+00> : vector<256x128xf32>
    %26 = tpu.matmul %24, %25, %cst_20 {dimension_numbers = #tpu.dot_dimension_numbers<[1], [0], [0], [1], [0, 0, 1, 1], [], []>} : vector<256x256xbf16>, vector<256x128xbf16>, vector<256x128xf32> -> vector<256x128xf32>
    %c0_21 = arith.constant 0 : index
    %c0_22 = arith.constant 0 : index
    %27 = vector.load %arg9[%c0_21, %c0_22] : memref<1x128xf32, #tpu.memory_space<vmem>>, vector<1x128xf32>
    %28 = vector.broadcast %27 : vector<1x128xf32> to vector<256x128xf32>
    %29 = arith.addf %26, %28 : vector<256x128xf32>
    %c0_23 = arith.constant 0 : index
    %c0_24 = arith.constant 0 : index
    %30 = vector.load %arg10[%c0_23, %c0_24] : memref<256x128xf32, #tpu.memory_space<vmem>>, vector<256x128xf32>
    tpu.vector_store %arg10[%c0_23, %c0_24], %29 {strides = array<i32>} : memref<256x128xf32, #tpu.memory_space<vmem>>, vector<256x128xf32>,
    return
  }
  func.func @transform_0(%arg0: i32) -> (i32, i32) {
    %c0_i32 = arith.constant 0 : i32
    %c0_i32_0 = arith.constant 0 : i32
    return %arg0, %c0_i32 : i32, i32
  }
  func.func @transform_1(%arg0: i32) -> (i32, i32) {
    %c0_i32 = arith.constant 0 : i32
    %c0_i32_0 = arith.constant 0 : i32
    %c0_i32_1 = arith.constant 0 : i32
    return %c0_i32, %c0_i32_0 : i32, i32
  }
  func.func @transform_2(%arg0: i32) -> (i32, i32) {
    %c0_i32 = arith.constant 0 : i32
    %c0_i32_0 = arith.constant 0 : i32
    %c0_i32_1 = arith.constant 0 : i32
    return %c0_i32, %c0_i32_0 : i32, i32
  }
  func.func @transform_3(%arg0: i32) -> (i32, i32) {
    %c0_i32 = arith.constant 0 : i32
    %c0_i32_0 = arith.constant 0 : i32
    %c0_i32_1 = arith.constant 0 : i32
    return %c0_i32, %c0_i32_0 : i32, i32
  }
  func.func @transform_4(%arg0: i32) -> (i32, i32) {
    %c0_i32 = arith.constant 0 : i32
    %c0_i32_0 = arith.constant 0 : i32
    %c0_i32_1 = arith.constant 0 : i32
    return %c0_i32, %c0_i32_0 : i32, i32
  }
  func.func @transform_5(%arg0: i32) -> (i32, i32) {
    %c0_i32 = arith.constant 0 : i32
    %c0_i32_0 = arith.constant 0 : i32
    %c0_i32_1 = arith.constant 0 : i32
    return %c0_i32, %c0_i32_0 : i32, i32
  }
  func.func @transform_6(%arg0: i32) -> (i32, i32) {
    %c0_i32 = arith.constant 0 : i32
    %c0_i32_0 = arith.constant 0 : i32
    %c0_i32_1 = arith.constant 0 : i32
    return %c0_i32, %c0_i32_0 : i32, i32
  }
  func.func @transform_7(%arg0: i32) -> (i32, i32) {
    %c0_i32 = arith.constant 0 : i32
    %c0_i32_0 = arith.constant 0 : i32
    %c0_i32_1 = arith.constant 0 : i32
    return %c0_i32, %c0_i32_0 : i32, i32
  }
  func.func @transform_8(%arg0: i32) -> (i32, i32) {
    %c0_i32 = arith.constant 0 : i32
    %c0_i32_0 = arith.constant 0 : i32
    %c0_i32_1 = arith.constant 0 : i32
    return %c0_i32, %c0_i32_0 : i32, i32
  }
  func.func @transform_9(%arg0: i32) -> (i32, i32) {
    %c0_i32 = arith.constant 0 : i32
    %c0_i32_0 = arith.constant 0 : i32
    return %arg0, %c0_i32 : i32, i32
  }
}

</mosaic_0001>

<bundles_post_ra>
// kernel: net100_forward.1
= control target key start
LH: loop header
LB: loop body
LE: loop exit
PB: predicated region body
PF: predicated region fallthrough
CT: control target
= control target key end

     0   :  { %v2270_v1 = vmov 0   ;;  %s3029_s1 = inlined_call_operand.vmem [shape: bf16[128,256], index: 1, kind: input, shape index: {}]   ;;  %s3030_s0 = inlined_call_operand.vmem [shape: bf16[256,128], index: 0, kind: input, shape index: {}]   ;;  %s3031_s3 = inlined_call_operand.vmem [shape: bf16[256,256], index: 3, kind: input, shape index: {}]   ;;  %s3032_s5 = inlined_call_operand.vmem [shape: bf16[256,256], index: 5, kind: input, shape index: {}]   ;;  %s3033_s2 = inlined_call_operand.vmem [shape: f32[1,256], index: 2, kind: input, shape index: {}]   ;;  %s3034_s4 = inlined_call_operand.vmem [shape: f32[1,256], index: 4, kind: input, shape index: {}]   ;;  %s3035_s7 = inlined_call_operand.vmem [shape: bf16[256,128], index: 7, kind: input, shape index: {}]   ;;  %s3036_s6 = inlined_call_operand.vmem [shape: f32[1,256], index: 6, kind: input, shape index: {}]   ;;  %s3037_s8 = inlined_call_operand.vmem [shape: f32[1,128], index: 8, kind: input, shape index: {}]   ;;  %s3038_s9 = inlined_call_operand.vmem [shape: f32[256,128], index: 9, kind: output, shape index: {}]  }
   0x1   :  { %v2118_v0 = vld [vmem:[%s3029_s1 + $0x4] ss:$8 sps:$4 sm:$0xff]   ;;  %301 = vmatprep.mubr.bf16.mxu0 %v2270_v1  ;;  %v2120_v2 = vld [vmem:[%s3029_s1] ss:$8 sps:$4 sm:$0xff]   ;;  %v2121_v3 = vld [vmem:[%s3029_s1 + $0x14] ss:$8 sps:$4 sm:$0xff]  }
   0x2   :  { %269 = vmatprep.subr.bf16.mxu0 %v2118_v0  ;;  %v2123_v4 = vld [vmem:[%s3029_s1 + $0x10] ss:$8 sps:$4 sm:$0xff]   ;;  %v2124_v5 = vld [vmem:[%s3029_s1 + $0x24] ss:$8 sps:$4 sm:$0xff]   ;;  %v2126_v6 = vld [vmem:[%s3029_s1 + $0x20] ss:$8 sps:$4 sm:$0xff]  }
   0x3   :  { %270 = vmatpush1.bf16.msra.mxu0 %v2120_v2  ;;  %v2127_v7 = vld [vmem:[%s3029_s1 + $0x34] ss:$8 sps:$4 sm:$0xff]   ;;  %v2129_v8 = vld [vmem:[%s3029_s1 + $0x30] ss:$8 sps:$4 sm:$0xff]   ;;  %v2130_v9 = vld [vmem:[%s3029_s1 + $0x44] ss:$8 sps:$4 sm:$0xff]  }
   0x4   :  { %271 = vmatprep.subr.bf16.mxu0 %v2121_v3  ;;  %v2132_v10 = vld [vmem:[%s3029_s1 + $0x40] ss:$8 sps:$4 sm:$0xff]   ;;  %v2133_v11 = vld [vmem:[%s3029_s1 + $0x54] ss:$8 sps:$4 sm:$0xff]   ;;  %v2135_v12 = vld [vmem:[%s3029_s1 + $0x50] ss:$8 sps:$4 sm:$0xff]  }
   0x5   :  { %v2136_v13 = vld [vmem:[%s3029_s1 + $0x64] ss:$8 sps:$4 sm:$0xff]   ;;  %v2138_v14 = vld [vmem:[%s3029_s1 + $0x60] ss:$8 sps:$4 sm:$0xff]   ;;  %v2139_v15 = vld [vmem:[%s3029_s1 + $0x74] ss:$8 sps:$4 sm:$0xff]  }
   0x6   :  { %v2141_v16 = vld [vmem:[%s3029_s1 + $0x70] ss:$8 sps:$4 sm:$0xff]   ;;  %v2158_v17 = vld [vmem:[%s3031_s3 + $0x4] ss:$8 sps:$4 sm:$0xff]   ;;  %v2160_v18 = vld [vmem:[%s3031_s3] ss:$8 sps:$4 sm:$0xff]  }
   0x7   :  { %272 = vmatpush1.bf16.msra.mxu0 %v2123_v4  ;;  %762 = vmatprep.subr.bf16.mxu1 %v2158_v17  ;;  %v2161_v19 = vld [vmem:[%s3031_s3 + $0x14] ss:$8 sps:$4 sm:$0xff]   ;;  %v2142_v20 = vld [vmem:[%s3030_s0] sm:$0xff]   ;;  %v2163_v21 = vld [vmem:[%s3031_s3 + $0x10] ss:$8 sps:$4 sm:$0xff]   ;;  %v83_v4 = vlaneseq }
   0x8   :  { %273 = vmatprep.subr.bf16.mxu0 %v2124_v5  ;;  %763 = vmatpush1.bf16.msra.mxu1 %v2160_v18  ;;  %v2164_v22 = vld [vmem:[%s3031_s3 + $0x24] ss:$8 sps:$4 sm:$0xff]   ;;  %v2166_v23 = vld [vmem:[%s3031_s3 + $0x20] ss:$8 sps:$4 sm:$0xff]   ;;  %v2167_v24 = vld [vmem:[%s3031_s3 + $0x34] ss:$8 sps:$4 sm:$0xff]  }
   0x9   :  { %764 = vmatprep.subr.bf16.mxu1 %v2161_v19  ;;  %v2143_v25 = vld [vmem:[%s3030_s0 + $0x8] sm:$0xff]   ;;  %v2169_v26 = vld [vmem:[%s3031_s3 + $0x30] ss:$8 sps:$4 sm:$0xff]   ;;  %v2173_v29 = vld [vmem:[%s3031_s3 + $0x54] ss:$8 sps:$4 sm:$0xff]  }
   0xa   :  { %v2170_v27 = vld [vmem:[%s3031_s3 + $0x44] ss:$8 sps:$4 sm:$0xff]   ;;  %v2172_v28 = vld [vmem:[%s3031_s3 + $0x40] ss:$8 sps:$4 sm:$0xff]   ;;  %v2144_v30 = vld [vmem:[%s3030_s0 + $0x10] sm:$0xff]  }
   0xb   :  { %274 = vmatpush1.bf16.msra.mxu0 %v2126_v6  ;;  %v2175_v31 = vld [vmem:[%s3031_s3 + $0x50] ss:$8 sps:$4 sm:$0xff]   ;;  %v2176_v32 = vld [vmem:[%s3031_s3 + $0x64] ss:$8 sps:$4 sm:$0xff]   ;;  %v2178_v33 = vld [vmem:[%s3031_s3 + $0x60] ss:$8 sps:$4 sm:$0xff]  }
   0xc   :  { %275 = vmatprep.subr.bf16.mxu0 %v2127_v7  ;;  %765 = vmatpush1.bf16.msra.mxu1 %v2163_v21  ;;  %v2179_v34 = vld [vmem:[%s3031_s3 + $0x74] ss:$8 sps:$4 sm:$0xff]   ;;  %v2181_v36 = vld [vmem:[%s3031_s3 + $0x70] ss:$8 sps:$4 sm:$0xff]   ;;  %v2182_v37 = vld [vmem:[%s3031_s3 + $0x84] ss:$8 sps:$4 sm:$0xff]  }
   0xd   :  { %766 = vmatprep.subr.bf16.mxu1 %v2164_v22  ;;  %v2145_v35 = vld [vmem:[%s3030_s0 + $0x18] sm:$0xff]   ;;  %v2184_v38 = vld [vmem:[%s3031_s3 + $0x80] ss:$8 sps:$4 sm:$0xff]   ;;  %v2188_v42 = vld [vmem:[%s3031_s3 + $0xa4] ss:$8 sps:$4 sm:$0xff]   ;;  %v84_v6 = vshrl.u32 %v83_v4, 7 }
   0xe   :  { %v2185_v39 = vld [vmem:[%s3031_s3 + $0x94] ss:$8 sps:$4 sm:$0xff]   ;;  %v2146_v40 = vld [vmem:[%s3030_s0 + $0x20] sm:$0xff]   ;;  %v2187_v41 = vld [vmem:[%s3031_s3 + $0x90] ss:$8 sps:$4 sm:$0xff]  }
   0xf   :  { %276 = vmatpush1.bf16.msra.mxu0 %v2129_v8  ;;  %v2190_v43 = vld [vmem:[%s3031_s3 + $0xa0] ss:$8 sps:$4 sm:$0xff]   ;;  %v2191_v44 = vld [vmem:[%s3031_s3 + $0xb4] ss:$8 sps:$4 sm:$0xff]   ;;  %v2193_v46 = vld [vmem:[%s3031_s3 + $0xb0] ss:$8 sps:$4 sm:$0xff]  }
  0x10   :  { %277 = vmatprep.subr.bf16.mxu0 %v2130_v9  ;;  %767 = vmatpush1.bf16.msra.mxu1 %v2166_v23  ;;  %v2147_v45 = vld [vmem:[%s3030_s0 + $0x28] sm:$0xff]   ;;  %v2197_v49 = vld [vmem:[%s3031_s3 + $0xd4] ss:$8 sps:$4 sm:$0xff]   ;;  %v2150_v52 = vld [vmem:[%s3030_s0 + $0x40] sm:$0xff]   ;;  %v2541_v7 = vsub.s32 0, %v84_v6  ;;  %v2546_v9 = vsub.s32 1, %v84_v6 }
  0x11   :  { %768 = vmatprep.subr.bf16.mxu1 %v2167_v24  ;;  %v2194_v47 = vld [vmem:[%s3031_s3 + $0xc4] ss:$8 sps:$4 sm:$0xff]   ;;  %v2196_v48 = vld [vmem:[%s3031_s3 + $0xc0] ss:$8 sps:$4 sm:$0xff]   ;;  %v2148_v50 = vld [vmem:[%s3030_s0 + $0x30] sm:$0xff]  }
  0x12   :  { %v2149_v51 = vld [vmem:[%s3030_s0 + $0x38] sm:$0xff]   ;;  %v2151_v53 = vld [vmem:[%s3030_s0 + $0x48] sm:$0xff]   ;;  %v2152_v54 = vld [vmem:[%s3030_s0 + $0x50] sm:$0xff]  }
  0x13   :  { %278 = vmatpush1.bf16.msra.mxu0 %v2132_v10  ;;  %v2199_v55 = vld [vmem:[%s3031_s3 + $0xd0] ss:$8 sps:$4 sm:$0xff]   ;;  %v2200_v57 = vld [vmem:[%s3031_s3 + $0xe4] ss:$8 sps:$4 sm:$0xff]   ;;  %v2202_v58 = vld [vmem:[%s3031_s3 + $0xe0] ss:$8 sps:$4 sm:$0xff]  }
  0x14   :  { %279 = vmatprep.subr.bf16.mxu0 %v2133_v11  ;;  %769 = vmatpush1.bf16.msra.mxu1 %v2169_v26  ;;  %v2153_v56 = vld [vmem:[%s3030_s0 + $0x58] sm:$0xff]   ;;  %v2154_v61 = vld [vmem:[%s3030_s0 + $0x60] sm:$0xff]   ;;  %v2155_v62 = vld [vmem:[%s3030_s0 + $0x68] sm:$0xff]  }
  0x15   :  { %770 = vmatprep.subr.bf16.mxu1 %v2170_v27  ;;  %v2203_v59 = vld [vmem:[%s3031_s3 + $0xf4] ss:$8 sps:$4 sm:$0xff]   ;;  %v2205_v60 = vld [vmem:[%s3031_s3 + $0xf0] ss:$8 sps:$4 sm:$0xff]   ;;  %v2206_v2 = vld [vmem:[%s3032_s5] ss:$8 sps:$4 sm:$0xff]  }
  0x16   :  { %v2156_v63 = vld [vmem:[%s3030_s0 + $0x70] sm:$0xff]   ;;  %v2157_v0 = vld [vmem:[%s3030_s0 + $0x78] sm:$0xff]   ;;  %v2208_v3 = vld [vmem:[%s3032_s5 + $0x4] ss:$8 sps:$4 sm:$0xff]  }
  0x17   :  { %280 = vmatpush1.bf16.msra.mxu0 %v2135_v12  ;;  %v2211_v5 = vld [vmem:[%s3032_s5 + $0x14] ss:$8 sps:$4 sm:$0xff]   ;;  %v81_v8 = vld [vmem:[%s3033_s2] sm:$0x3]  ;;  %v2214_v11 = vld [vmem:[%s3032_s5 + $0x24] ss:$8 sps:$4 sm:$0xff]  }
  0x18   :  { %281 = vmatprep.subr.bf16.mxu0 %v2136_v13  ;;  %771 = vmatpush1.bf16.msra.mxu1 %v2172_v28  ;;  %v2212_v10 = vld [vmem:[%s3032_s5 + $0x20] ss:$8 sps:$4 sm:$0xff]   ;;  %v2555_v12 = vrot.slane %v81_v8, %v2541_v7  ;;  %v2558_v13 = vrot.slane %v81_v8, %v2546_v9  ;;  %v2220_v24 = vld [vmem:[%s3032_s5 + $0x44] ss:$8 sps:$4 sm:$0xff]   ;;  %v2223_v26 = vld [vmem:[%s3032_s5 + $0x54] ss:$8 sps:$4 sm:$0xff]  }
  0x19   :  { %772 = vmatprep.subr.bf16.mxu1 %v2173_v29  ;;  %v2218_v23 = vld [vmem:[%s3032_s5 + $0x40] ss:$8 sps:$4 sm:$0xff]   ;;  %v2238_v8 = vld [vmem:[%s3032_s5 + $0xa4] ss:$8 sps:$4 sm:$0xff]  }
  0x1b   :  { %282 = vmatpush1.bf16.msra.mxu0 %v2138_v14 }
  0x1c   :  { %283 = vmatprep.subr.bf16.mxu0 %v2139_v15  ;;  %773 = vmatpush1.bf16.msra.mxu1 %v2175_v31  ;;  %v2215_v15 = vld [vmem:[%s3032_s5 + $0x30] ss:$8 sps:$4 sm:$0xff]  }
  0x1d   :  { %774 = vmatprep.subr.bf16.mxu1 %v2176_v32  ;;  %v2221_v32 = vld [vmem:[%s3032_s5 + $0x50] ss:$8 sps:$4 sm:$0xff]  }
  0x1f   :  { %284 = vmatpush1.bf16.msra.mxu0 %v2141_v16  ;;  %v2217_v16 = vld [vmem:[%s3032_s5 + $0x34] ss:$8 sps:$4 sm:$0xff]  }
  0x20   :  { %775 = vmatpush1.bf16.msra.mxu1 %v2178_v33  ;;  %1255 = vmatprep.subr.bf16.mxu0 %v2208_v3 }
  0x21   :  { %776 = vmatprep.subr.bf16.mxu1 %v2179_v34 }
  0x22   :  { %302 = vmatmul.mubr.bf16.vlgmr.msra.gmra.mrb[0].mxu0 %v2142_v20 }
  0x23   :  { %311 = vmatprep.mubr.bf16.mxu0 %v2270_v1  ;;  %1256 = vmatpush1.bf16.msra.mxu0 %v2206_v2 }
  0x24   :  { %777 = vmatpush1.bf16.msra.mxu1 %v2181_v36  ;;  %1257 = vmatprep.subr.bf16.mxu0 %v2211_v5 }
  0x25   :  { %778 = vmatprep.subr.bf16.mxu1 %v2182_v37 }
  0x28   :  { %779 = vmatpush1.bf16.msra.mxu1 %v2184_v38 }
  0x29   :  { %780 = vmatprep.subr.bf16.mxu1 %v2185_v39 }
  0x2a   :  { %312 = vmatmul.mubr.bf16.gmra.mrb[4].mxu0 %v2143_v25 }
  0x2b   :  { %321 = vmatprep.mubr.bf16.mxu0 %v2270_v1 }
  0x2c   :  { %781 = vmatpush1.bf16.msra.mxu1 %v2187_v41 }
  0x2d   :  { %782 = vmatprep.subr.bf16.mxu1 %v2188_v42  ;;  %v2224_v42 = vld [vmem:[%s3032_s5 + $0x60] ss:$8 sps:$4 sm:$0xff]  }
  0x30   :  { %783 = vmatpush1.bf16.msra.mxu1 %v2190_v43 }
  0x31   :  { %784 = vmatprep.subr.bf16.mxu1 %v2191_v44  ;;  %v2229_v44 = vld [vmem:[%s3032_s5 + $0x74] ss:$8 sps:$4 sm:$0xff]  }
  0x32   :  { %322 = vmatmul.mubr.bf16.gmra.mrb[8].mxu0 %v2144_v30 }
  0x33   :  { %331 = vmatprep.mubr.bf16.mxu0 %v2270_v1 }
  0x34   :  { %785 = vmatpush1.bf16.msra.mxu1 %v2193_v46 }
  0x35   :  { %786 = vmatprep.subr.bf16.mxu1 %v2194_v47 }
  0x38   :  { %787 = vmatpush1.bf16.msra.mxu1 %v2196_v48 }
  0x39   :  { %788 = vmatprep.subr.bf16.mxu1 %v2197_v49 }
  0x3a   :  { %332 = vmatmul.mubr.bf16.gmra.mrb[12].mxu0 %v2145_v35  ;;  %v2226_v35 = vld [vmem:[%s3032_s5 + $0x64] ss:$8 sps:$4 sm:$0xff]  }
  0x3b   :  { %341 = vmatprep.mubr.bf16.mxu0 %v2270_v1 }
  0x3c   :  { %789 = vmatpush1.bf16.msra.mxu1 %v2199_v55 }
  0x3d   :  { %790 = vmatprep.subr.bf16.mxu1 %v2200_v57 }
  0x40   :  { %791 = vmatpush1.bf16.msra.mxu1 %v2202_v58 }
  0x41   :  { %792 = vmatprep.subr.bf16.mxu1 %v2203_v59 }
  0x42   :  { %342 = vmatmul.mubr.bf16.gmra.mrb[16].mxu0 %v2146_v40 }
  0x43   :  { %351 = vmatprep.mubr.bf16.mxu0 %v2270_v1 }
  0x44   :  { %793 = vmatpush1.bf16.msra.mxu1 %v2205_v60  ;;  %v2230_v60 = vld [vmem:[%s3032_s5 + $0x80] ss:$8 sps:$4 sm:$0xff]  }
  0x4a   :  { %352 = vmatmul.mubr.bf16.gmra.mrb[20].mxu0 %v2147_v45 }
  0x4b   :  { %361 = vmatprep.mubr.bf16.mxu0 %v2270_v1 }
  0x52   :  { %362 = vmatmul.mubr.bf16.gmra.mrb[24].mxu0 %v2148_v50  ;;  %v2227_v50 = vld [vmem:[%s3032_s5 + $0x70] ss:$8 sps:$4 sm:$0xff]  }
  0x53   :  { %371 = vmatprep.mubr.bf16.mxu0 %v2270_v1 }
  0x5a   :  { %372 = vmatmul.mubr.bf16.gmra.mrb[28].mxu0 %v2149_v51 }
  0x5b   :  { %381 = vmatprep.mubr.bf16.mxu0 %v2270_v1 }
  0x62   :  { %382 = vmatmul.mubr.bf16.gmra.mrb[32].mxu0 %v2150_v52 }
  0x63   :  { %391 = vmatprep.mubr.bf16.mxu0 %v2270_v1 }
  0x6a   :  { %392 = vmatmul.mubr.bf16.gmra.mrb[36].mxu0 %v2151_v53  ;;  %v2232_v53 = vld [vmem:[%s3032_s5 + $0x84] ss:$8 sps:$4 sm:$0xff]  }
  0x6b   :  { %401 = vmatprep.mubr.bf16.mxu0 %v2270_v1 }
  0x72   :  { %402 = vmatmul.mubr.bf16.gmra.mrb[40].mxu0 %v2152_v54 }
  0x73   :  { %411 = vmatprep.mubr.bf16.mxu0 %v2270_v1 }
  0x7a   :  { %412 = vmatmul.mubr.bf16.gmra.mrb[44].mxu0 %v2153_v56 }
  0x7b   :  { %421 = vmatprep.mubr.bf16.mxu0 %v2270_v1 }
  0x82   :  { %422 = vmatmul.mubr.bf16.gmra.mrb[48].mxu0 %v2154_v61 }
  0x83   :  { %431 = vmatprep.mubr.bf16.mxu0 %v2270_v1 }
  0x8a   :  { %432 = vmatmul.mubr.bf16.gmra.mrb[52].mxu0 %v2155_v62  ;;  %v2235_v62 = vld [vmem:[%s3032_s5 + $0x94] ss:$8 sps:$4 sm:$0xff]  }
  0x8b   :  { %441 = vmatprep.mubr.bf16.mxu0 %v2270_v1 }
  0x92   :  { %442 = vmatmul.mubr.bf16.gmra.mrb[56].mxu0 %v2156_v63 }
  0x93   :  { %451 = vmatprep.mubr.bf16.mxu0 %v2270_v1  ;;  %v2209_v1 = vld [vmem:[%s3032_s5 + $0x10] ss:$8 sps:$4 sm:$0xff]  }
  0x94   :  { %1258 = vmatpush1.bf16.msra.mxu0 %v2209_v1  ;;  %v2233_v1 = vld [vmem:[%s3032_s5 + $0x90] ss:$8 sps:$4 sm:$0xff]  }
  0x95   :  { %1259 = vmatprep.subr.bf16.mxu0 %v2214_v11 }
  0x98   :  { %1260 = vmatpush1.bf16.msra.mxu0 %v2212_v10 }
  0x99   :  { %1261 = vmatprep.subr.bf16.mxu0 %v2217_v16 }
  0x9a   :  { %452 = vmatmul.mubr.bf16.gmra.mrb[60].mxu0 %v2157_v0 }
  0x9c   :  { %1262 = vmatpush1.bf16.msra.mxu0 %v2215_v15 }
  0x9d   :  { %1263 = vmatprep.subr.bf16.mxu0 %v2220_v24 }
  0xa0   :  { %1264 = vmatpush1.bf16.msra.mxu0 %v2218_v23 }
  0xa1   :  { %1265 = vmatprep.subr.bf16.mxu0 %v2223_v26  ;;  %v2239_v26 = vld [vmem:[%s3032_s5 + $0xb0] ss:$8 sps:$4 sm:$0xff]  }
  0xa4   :  { %1266 = vmatpush1.bf16.msra.mxu0 %v2221_v32 }
  0xa5   :  { %1267 = vmatprep.subr.bf16.mxu0 %v2226_v35 }
  0xa8   :  { %1268 = vmatpush1.bf16.msra.mxu0 %v2224_v42 }
  0xa9   :  { %1269 = vmatprep.subr.bf16.mxu0 %v2229_v44  ;;  %v2245_v44 = vld [vmem:[%s3032_s5 + $0xd0] ss:$8 sps:$4 sm:$0xff]  }
  0xac   :  { %1270 = vmatpush1.bf16.msra.mxu0 %v2227_v50 }
  0xad   :  { %1271 = vmatprep.subr.bf16.mxu0 %v2232_v53 }
  0xb0   :  { %1272 = vmatpush1.bf16.msra.mxu0 %v2230_v60 }
  0xb1   :  { %1273 = vmatprep.subr.bf16.mxu0 %v2235_v62 }
  0xb4   :  { %1274 = vmatpush1.bf16.msra.mxu0 %v2233_v1 }
  0xb5   :  { %1275 = vmatprep.subr.bf16.mxu0 %v2238_v8 }
  0xf5   :  { %v303_v14 = vpop.f32.mrb[0].mxu0 }
  0xf6   :  { %v304_v17 = vadd.f32 %v303_v14, %v2555_v12  ;;  %v305_v18 = vpop.f32.mrb[1].mxu0 }
  0xf7   :  { %v306_v19 = vadd.f32 %v305_v18, %v2558_v13  ;;  %v307_v20 = vpop.f32.mrb[2].mxu0  ;;  %v2236_v18 = vld [vmem:[%s3032_s5 + $0xa0] ss:$8 sps:$4 sm:$0xff]  }
  0xf8   :  { %v308_v21 = vadd.f32 %v307_v20, %v2555_v12  ;;  %v309_v22 = vpop.f32.mrb[3].mxu0  ;;  %v462_v27 = vmax.f32 %v304_v17, 0.0  ;;  %v2241_v20 = vld [vmem:[%s3032_s5 + $0xb4] ss:$8 sps:$4 sm:$0xff]   ;;  %1276 = vmatpush1.bf16.msra.mxu0 %v2236_v18 }
  0xf9   :  { %v310_v25 = vadd.f32 %v309_v22, %v2558_v13  ;;  %v463_v29 = vmax.f32 %v306_v19, 0.0  ;;  %1277 = vmatprep.subr.bf16.mxu0 %v2241_v20 }
  0xfa   :  { %v464_v28 = vmax.f32 %v308_v21, 0.0 }
  0xfb   :  { %v465_v30 = vmax.f32 %v310_v25, 0.0 }
  0xfc   :  { %v526_v31 = vpack.c.bf16 %v464_v28, %v462_v27  ;;  %1278 = vmatpush1.bf16.msra.mxu0 %v2239_v26 }
  0xfd   :  { %v313_v33 = vpop.f32.mrb[4].mxu0  ;;  %v527_v34 = vpack.c.bf16 %v465_v30, %v463_v29  ;;  %v2244_v29 = vld [vmem:[%s3032_s5 + $0xc4] ss:$8 sps:$4 sm:$0xff]  }
  0xfe   :  { %v314_v36 = vadd.f32 %v313_v33, %v2555_v12  ;;  %v315_v37 = vpop.f32.mrb[5].mxu0  ;;  %1279 = vmatprep.subr.bf16.mxu0 %v2244_v29 }
  0xff   :  { %v316_v38 = vadd.f32 %v315_v37, %v2558_v13  ;;  %v317_v39 = vpop.f32.mrb[6].mxu0  ;;  %794 = vmatprep.mubr.bf16.mxu1 %v527_v34 }
 0x100   :  { %v318_v40 = vadd.f32 %v317_v39, %v2555_v12  ;;  %v319_v41 = vpop.f32.mrb[7].mxu0  ;;  %795 = vmatmul.mubr.bf16.vlgmr.msra.gmra.mrb[0].mxu1 %v526_v31  ;;  %v466_v45 = vmax.f32 %v314_v36, 0.0  ;;  %v2242_v36 = vld [vmem:[%s3032_s5 + $0xc0] ss:$8 sps:$4 sm:$0xff]  }
 0x101   :  { %v320_v43 = vadd.f32 %v319_v41, %v2558_v13  ;;  %v467_v47 = vmax.f32 %v316_v38, 0.0  ;;  %v2247_v38 = vld [vmem:[%s3032_s5 + $0xd4] ss:$8 sps:$4 sm:$0xff]   ;;  %1280 = vmatpush1.bf16.msra.mxu0 %v2242_v36 }
 0x102   :  { %v468_v46 = vmax.f32 %v318_v40, 0.0  ;;  %1281 = vmatprep.subr.bf16.mxu0 %v2247_v38 }
 0x103   :  { %v469_v48 = vmax.f32 %v320_v43, 0.0 }
 0x104   :  { %v528_v49 = vpack.c.bf16 %v468_v46, %v466_v45 }
 0x105   :  { %v529_v51 = vpack.c.bf16 %v469_v48, %v467_v47  ;;  %v323_v52 = vpop.f32.mrb[8].mxu0  ;;  %v2250_v47 = vld [vmem:[%s3032_s5 + $0xe4] ss:$8 sps:$4 sm:$0xff]   ;;  %1282 = vmatpush1.bf16.msra.mxu0 %v2245_v44 }
 0x106   :  { %v324_v54 = vadd.f32 %v323_v52, %v2555_v12  ;;  %v325_v55 = vpop.f32.mrb[9].mxu0  ;;  %1283 = vmatprep.subr.bf16.mxu0 %v2250_v47 }
 0x107   :  { %v326_v56 = vadd.f32 %v325_v55, %v2558_v13  ;;  %v327_v57 = vpop.f32.mrb[10].mxu0  ;;  %804 = vmatprep.mubr.bf16.mxu1 %v529_v51 }
 0x108   :  { %v328_v58 = vadd.f32 %v327_v57, %v2555_v12  ;;  %v329_v59 = vpop.f32.mrb[11].mxu0  ;;  %805 = vmatmul.mubr.bf16.gmra.mrb[4].mxu1 %v528_v49  ;;  %v470_v63 = vmax.f32 %v324_v54, 0.0  ;;  %v2248_v54 = vld [vmem:[%s3032_s5 + $0xe0] ss:$8 sps:$4 sm:$0xff]  }
 0x109   :  { %v330_v61 = vadd.f32 %v329_v59, %v2558_v13  ;;  %v471_v2 = vmax.f32 %v326_v56, 0.0  ;;  %1284 = vmatpush1.bf16.msra.mxu0 %v2248_v54 }
 0x10a   :  { %v472_v0 = vmax.f32 %v328_v58, 0.0 }
 0x10b   :  { %v473_v3 = vmax.f32 %v330_v61, 0.0 }
 0x10c   :  { %v530_v4 = vpack.c.bf16 %v472_v0, %v470_v63 }
 0x10d   :  { %v531_v5 = vpack.c.bf16 %v473_v3, %v471_v2  ;;  %v333_v6 = vpop.f32.mrb[12].mxu0 }
 0x10e   :  { %v334_v10 = vadd.f32 %v333_v6, %v2555_v12  ;;  %v335_v11 = vpop.f32.mrb[13].mxu0 }
 0x10f   :  { %v336_v14 = vadd.f32 %v335_v11, %v2558_v13  ;;  %v337_v15 = vpop.f32.mrb[14].mxu0  ;;  %814 = vmatprep.mubr.bf16.mxu1 %v531_v5 }
 0x110   :  { %v338_v16 = vadd.f32 %v337_v15, %v2555_v12  ;;  %v339_v17 = vpop.f32.mrb[15].mxu0  ;;  %815 = vmatmul.mubr.bf16.gmra.mrb[8].mxu1 %v530_v4  ;;  %v474_v21 = vmax.f32 %v334_v10, 0.0 }
 0x111   :  { %v340_v19 = vadd.f32 %v339_v17, %v2558_v13  ;;  %v475_v23 = vmax.f32 %v336_v14, 0.0 }
 0x112   :  { %v476_v22 = vmax.f32 %v338_v16, 0.0 }
 0x113   :  { %v477_v24 = vmax.f32 %v340_v19, 0.0 }
 0x114   :  { %v532_v25 = vpack.c.bf16 %v476_v22, %v474_v21 }
 0x115   :  { %v533_v27 = vpack.c.bf16 %v477_v24, %v475_v23  ;;  %v343_v28 = vpop.f32.mrb[16].mxu0 }
 0x116   :  { %v344_v30 = vadd.f32 %v343_v28, %v2555_v12  ;;  %v345_v31 = vpop.f32.mrb[17].mxu0 }
 0x117   :  { %v346_v32 = vadd.f32 %v345_v31, %v2558_v13  ;;  %v347_v33 = vpop.f32.mrb[18].mxu0  ;;  %824 = vmatprep.mubr.bf16.mxu1 %v533_v27 }
 0x118   :  { %v348_v34 = vadd.f32 %v347_v33, %v2555_v12  ;;  %v349_v35 = vpop.f32.mrb[19].mxu0  ;;  %825 = vmatmul.mubr.bf16.gmra.mrb[12].mxu1 %v532_v25  ;;  %v478_v39 = vmax.f32 %v344_v30, 0.0 }
 0x119   :  { %v350_v37 = vadd.f32 %v349_v35, %v2558_v13  ;;  %v479_v41 = vmax.f32 %v346_v32, 0.0 }
 0x11a   :  { %v480_v40 = vmax.f32 %v348_v34, 0.0 }
 0x11b   :  { %v481_v42 = vmax.f32 %v350_v37, 0.0 }
 0x11c   :  { %v534_v43 = vpack.c.bf16 %v480_v40, %v478_v39 }
 0x11d   :  { %v535_v45 = vpack.c.bf16 %v481_v42, %v479_v41  ;;  %v353_v46 = vpop.f32.mrb[20].mxu0 }
 0x11e   :  { %v354_v48 = vadd.f32 %v353_v46, %v2555_v12  ;;  %v355_v49 = vpop.f32.mrb[21].mxu0 }
 0x11f   :  { %v356_v50 = vadd.f32 %v355_v49, %v2558_v13  ;;  %v357_v51 = vpop.f32.mrb[22].mxu0  ;;  %834 = vmatprep.mubr.bf16.mxu1 %v535_v45 }
 0x120   :  { %v358_v52 = vadd.f32 %v357_v51, %v2555_v12  ;;  %v359_v53 = vpop.f32.mrb[23].mxu0  ;;  %835 = vmatmul.mubr.bf16.gmra.mrb[16].mxu1 %v534_v43  ;;  %v482_v56 = vmax.f32 %v354_v48, 0.0 }
 0x121   :  { %v360_v55 = vadd.f32 %v359_v53, %v2558_v13  ;;  %v483_v58 = vmax.f32 %v356_v50, 0.0 }
 0x122   :  { %v484_v57 = vmax.f32 %v358_v52, 0.0 }
 0x123   :  { %v485_v59 = vmax.f32 %v360_v55, 0.0 }
 0x124   :  { %v536_v60 = vpack.c.bf16 %v484_v57, %v482_v56 }
 0x125   :  { %v537_v61 = vpack.c.bf16 %v485_v59, %v483_v58  ;;  %v363_v62 = vpop.f32.mrb[24].mxu0 }
 0x126   :  { %v364_v63 = vadd.f32 %v363_v62, %v2555_v12  ;;  %v365_v0 = vpop.f32.mrb[25].mxu0 }
 0x127   :  { %v366_v2 = vadd.f32 %v365_v0, %v2558_v13  ;;  %v367_v3 = vpop.f32.mrb[26].mxu0  ;;  %844 = vmatprep.mubr.bf16.mxu1 %v537_v61 }
 0x128   :  { %v368_v4 = vadd.f32 %v367_v3, %v2555_v12  ;;  %v369_v1 = vpop.f32.mrb[27].mxu0  ;;  %845 = vmatmul.mubr.bf16.gmra.mrb[20].mxu1 %v536_v60  ;;  %v486_v6 = vmax.f32 %v364_v63, 0.0 }
 0x129   :  { %v370_v5 = vadd.f32 %v369_v1, %v2558_v13  ;;  %v487_v10 = vmax.f32 %v366_v2, 0.0 }
 0x12a   :  { %v488_v8 = vmax.f32 %v368_v4, 0.0 }
 0x12b   :  { %v489_v11 = vmax.f32 %v370_v5, 0.0 }
 0x12c   :  { %v538_v14 = vpack.c.bf16 %v488_v8, %v486_v6 }
 0x12d   :  { %v539_v15 = vpack.c.bf16 %v489_v11, %v487_v10  ;;  %v373_v16 = vpop.f32.mrb[28].mxu0 }
 0x12e   :  { %v374_v17 = vadd.f32 %v373_v16, %v2555_v12  ;;  %v375_v18 = vpop.f32.mrb[29].mxu0 }
 0x12f   :  { %v376_v19 = vadd.f32 %v375_v18, %v2558_v13  ;;  %v377_v20 = vpop.f32.mrb[30].mxu0  ;;  %854 = vmatprep.mubr.bf16.mxu1 %v539_v15 }
 0x130   :  { %v378_v21 = vadd.f32 %v377_v20, %v2555_v12  ;;  %v379_v22 = vpop.f32.mrb[31].mxu0  ;;  %855 = vmatmul.mubr.bf16.gmra.mrb[24].mxu1 %v538_v14  ;;  %v490_v24 = vmax.f32 %v374_v17, 0.0 }
 0x131   :  { %v380_v23 = vadd.f32 %v379_v22, %v2558_v13  ;;  %v491_v26 = vmax.f32 %v376_v19, 0.0 }
 0x132   :  { %v492_v25 = vmax.f32 %v378_v21, 0.0 }
 0x133   :  { %v493_v27 = vmax.f32 %v380_v23, 0.0 }
 0x134   :  { %v540_v28 = vpack.c.bf16 %v492_v25, %v490_v24 }
 0x135   :  { %v541_v29 = vpack.c.bf16 %v493_v27, %v491_v26  ;;  %v383_v30 = vpop.f32.mrb[32].mxu0 }
 0x136   :  { %v384_v31 = vadd.f32 %v383_v30, %v2555_v12  ;;  %v385_v32 = vpop.f32.mrb[33].mxu0 }
 0x137   :  { %v386_v33 = vadd.f32 %v385_v32, %v2558_v13  ;;  %v387_v34 = vpop.f32.mrb[34].mxu0  ;;  %864 = vmatprep.mubr.bf16.mxu1 %v541_v29 }
 0x138   :  { %v388_v35 = vadd.f32 %v387_v34, %v2555_v12  ;;  %v389_v36 = vpop.f32.mrb[35].mxu0  ;;  %865 = vmatmul.mubr.bf16.gmra.mrb[28].mxu1 %v540_v28  ;;  %v494_v38 = vmax.f32 %v384_v31, 0.0 }
 0x139   :  { %v390_v37 = vadd.f32 %v389_v36, %v2558_v13  ;;  %v495_v40 = vmax.f32 %v386_v33, 0.0  ;;  %v2253_v33 = vld [vmem:[%s3032_s5 + $0xf4] ss:$8 sps:$4 sm:$0xff]  }
 0x13a   :  { %v496_v39 = vmax.f32 %v388_v35, 0.0  ;;  %v2251_v35 = vld [vmem:[%s3032_s5 + $0xf0] ss:$8 sps:$4 sm:$0xff]   ;;  %1285 = vmatprep.subr.bf16.mxu0 %v2253_v33 }
 0x13b   :  { %v497_v41 = vmax.f32 %v390_v37, 0.0  ;;  %1286 = vmatpush1.bf16.msra.mxu0 %v2251_v35 }
 0x13c   :  { %v542_v42 = vpack.c.bf16 %v496_v39, %v494_v38 }
 0x13d   :  { %v543_v43 = vpack.c.bf16 %v497_v41, %v495_v40  ;;  %v393_v44 = vpop.f32.mrb[36].mxu0 }
 0x13e   :  { %v394_v45 = vadd.f32 %v393_v44, %v2555_v12  ;;  %v395_v46 = vpop.f32.mrb[37].mxu0 }
 0x13f   :  { %v396_v47 = vadd.f32 %v395_v46, %v2558_v13  ;;  %v397_v48 = vpop.f32.mrb[38].mxu0  ;;  %874 = vmatprep.mubr.bf16.mxu1 %v543_v43 }
 0x140   :  { %v398_v49 = vadd.f32 %v397_v48, %v2555_v12  ;;  %v399_v50 = vpop.f32.mrb[39].mxu0  ;;  %875 = vmatmul.mubr.bf16.gmra.mrb[32].mxu1 %v542_v42  ;;  %v498_v52 = vmax.f32 %v394_v45, 0.0 }
 0x141   :  { %v400_v51 = vadd.f32 %v399_v50, %v2558_v13  ;;  %v499_v54 = vmax.f32 %v396_v47, 0.0 }
 0x142   :  { %v500_v53 = vmax.f32 %v398_v49, 0.0 }
 0x143   :  { %v501_v55 = vmax.f32 %v400_v51, 0.0 }
 0x144   :  { %v544_v56 = vpack.c.bf16 %v500_v53, %v498_v52 }
 0x145   :  { %v545_v57 = vpack.c.bf16 %v501_v55, %v499_v54  ;;  %v403_v58 = vpop.f32.mrb[40].mxu0 }
 0x146   :  { %v404_v59 = vadd.f32 %v403_v58, %v2555_v12  ;;  %v405_v60 = vpop.f32.mrb[41].mxu0 }
 0x147   :  { %v406_v61 = vadd.f32 %v405_v60, %v2558_v13  ;;  %v407_v62 = vpop.f32.mrb[42].mxu0  ;;  %884 = vmatprep.mubr.bf16.mxu1 %v545_v57 }
 0x148   :  { %v408_v63 = vadd.f32 %v407_v62, %v2555_v12  ;;  %v409_v0 = vpop.f32.mrb[43].mxu0  ;;  %885 = vmatmul.mubr.bf16.gmra.mrb[36].mxu1 %v544_v56  ;;  %v502_v3 = vmax.f32 %v404_v59, 0.0 }
 0x149   :  { %v410_v2 = vadd.f32 %v409_v0, %v2558_v13  ;;  %v503_v1 = vmax.f32 %v406_v61, 0.0 }
 0x14a   :  { %v504_v4 = vmax.f32 %v408_v63, 0.0 }
 0x14b   :  { %v505_v5 = vmax.f32 %v410_v2, 0.0 }
 0x14c   :  { %v546_v6 = vpack.c.bf16 %v504_v4, %v502_v3 }
 0x14d   :  { %v547_v8 = vpack.c.bf16 %v505_v5, %v503_v1  ;;  %v413_v10 = vpop.f32.mrb[44].mxu0 }
 0x14e   :  { %v414_v11 = vadd.f32 %v413_v10, %v2555_v12  ;;  %v415_v14 = vpop.f32.mrb[45].mxu0 }
 0x14f   :  { %v416_v15 = vadd.f32 %v415_v14, %v2558_v13  ;;  %v417_v16 = vpop.f32.mrb[46].mxu0  ;;  %894 = vmatprep.mubr.bf16.mxu1 %v547_v8 }
 0x150   :  { %v418_v17 = vadd.f32 %v417_v16, %v2555_v12  ;;  %v419_v18 = vpop.f32.mrb[47].mxu0  ;;  %895 = vmatmul.mubr.bf16.gmra.mrb[40].mxu1 %v546_v6  ;;  %v506_v20 = vmax.f32 %v414_v11, 0.0 }
 0x151   :  { %v420_v19 = vadd.f32 %v419_v18, %v2558_v13  ;;  %v507_v22 = vmax.f32 %v416_v15, 0.0 }
 0x152   :  { %v508_v21 = vmax.f32 %v418_v17, 0.0 }
 0x153   :  { %v509_v23 = vmax.f32 %v420_v19, 0.0 }
 0x154   :  { %v548_v24 = vpack.c.bf16 %v508_v21, %v506_v20 }
 0x155   :  { %v549_v25 = vpack.c.bf16 %v509_v23, %v507_v22  ;;  %v423_v26 = vpop.f32.mrb[48].mxu0 }
 0x156   :  { %v424_v27 = vadd.f32 %v423_v26, %v2555_v12  ;;  %v425_v28 = vpop.f32.mrb[49].mxu0 }
 0x157   :  { %v426_v29 = vadd.f32 %v425_v28, %v2558_v13  ;;  %v427_v30 = vpop.f32.mrb[50].mxu0  ;;  %904 = vmatprep.mubr.bf16.mxu1 %v549_v25 }
 0x158   :  { %v428_v31 = vadd.f32 %v427_v30, %v2555_v12  ;;  %v429_v32 = vpop.f32.mrb[51].mxu0  ;;  %905 = vmatmul.mubr.bf16.gmra.mrb[44].mxu1 %v548_v24  ;;  %v510_v36 = vmax.f32 %v424_v27, 0.0  ;;  %v590_v24 = vld [vmem:[%s3034_s4] sm:$0x3] }
 0x159   :  { %v430_v34 = vadd.f32 %v429_v32, %v2558_v13  ;;  %v511_v38 = vmax.f32 %v426_v29, 0.0  ;;  %v2709_v25 = vrot.slane %v590_v24, %v2541_v7  ;;  %v2715_v26 = vrot.slane %v590_v24, %v2546_v9 }
 0x15a   :  { %v512_v37 = vmax.f32 %v428_v31, 0.0 }
 0x15b   :  { %v513_v39 = vmax.f32 %v430_v34, 0.0  ;;  %v2256_v34 = vld [vmem:[%s3035_s7 + $0x48] sm:$0xff]  }
 0x15c   :  { %v550_v40 = vpack.c.bf16 %v512_v37, %v510_v36  ;;  %v2257_v37 = vld [vmem:[%s3035_s7 + $0x8] sm:$0xff]  }
 0x15d   :  { %v551_v41 = vpack.c.bf16 %v513_v39, %v511_v38  ;;  %v433_v42 = vpop.f32.mrb[52].mxu0  ;;  %v2258_v39 = vld [vmem:[%s3035_s7 + $0x50] sm:$0xff]  }
 0x15e   :  { %v434_v43 = vadd.f32 %v433_v42, %v2555_v12  ;;  %v435_v44 = vpop.f32.mrb[53].mxu0 }
 0x15f   :  { %v436_v45 = vadd.f32 %v435_v44, %v2558_v13  ;;  %v437_v46 = vpop.f32.mrb[54].mxu0  ;;  %914 = vmatprep.mubr.bf16.mxu1 %v551_v41 }
 0x160   :  { %v438_v47 = vadd.f32 %v437_v46, %v2555_v12  ;;  %v439_v48 = vpop.f32.mrb[55].mxu0  ;;  %915 = vmatmul.mubr.bf16.gmra.mrb[48].mxu1 %v550_v40  ;;  %v514_v50 = vmax.f32 %v434_v43, 0.0 }
 0x161   :  { %v440_v49 = vadd.f32 %v439_v48, %v2558_v13  ;;  %v515_v52 = vmax.f32 %v436_v45, 0.0  ;;  %v2259_v45 = vld [vmem:[%s3035_s7 + $0x10] sm:$0xff]   ;;  %v2260_v48 = vld [vmem:[%s3035_s7 + $0x58] sm:$0xff]  }
 0x162   :  { %v516_v51 = vmax.f32 %v438_v47, 0.0 }
 0x163   :  { %v517_v53 = vmax.f32 %v440_v49, 0.0 }
 0x164   :  { %v552_v54 = vpack.c.bf16 %v516_v51, %v514_v50 }
 0x165   :  { %v553_v55 = vpack.c.bf16 %v517_v53, %v515_v52  ;;  %v443_v56 = vpop.f32.mrb[56].mxu0 }
 0x166   :  { %v444_v57 = vadd.f32 %v443_v56, %v2555_v12  ;;  %v445_v58 = vpop.f32.mrb[57].mxu0 }
 0x167   :  { %v446_v59 = vadd.f32 %v445_v58, %v2558_v13  ;;  %v447_v60 = vpop.f32.mrb[58].mxu0  ;;  %924 = vmatprep.mubr.bf16.mxu1 %v553_v55 }
 0x168   :  { %v448_v61 = vadd.f32 %v447_v60, %v2555_v12  ;;  %v449_v62 = vpop.f32.mrb[59].mxu0  ;;  %925 = vmatmul.mubr.bf16.gmra.mrb[52].mxu1 %v552_v54  ;;  %v518_v0 = vmax.f32 %v444_v57, 0.0  ;;  %v2261_v54 = vld [vmem:[%s3035_s7 + $0x18] sm:$0xff]   ;;  %v2262_v57 = vld [vmem:[%s3035_s7 + $0x60] sm:$0xff]  }
 0x169   :  { %v450_v63 = vadd.f32 %v449_v62, %v2558_v13  ;;  %v519_v3 = vmax.f32 %v446_v59, 0.0 }
 0x16a   :  { %v520_v2 = vmax.f32 %v448_v61, 0.0 }
 0x16b   :  { %v521_v4 = vmax.f32 %v450_v63, 0.0  ;;  %v2263_v63 = vld [vmem:[%s3035_s7 + $0x20] sm:$0xff]  }
 0x16c   :  { %v554_v1 = vpack.c.bf16 %v520_v2, %v518_v0 }
 0x16d   :  { %v555_v5 = vpack.c.bf16 %v521_v4, %v519_v3  ;;  %v453_v6 = vpop.f32.mrb[60].mxu0  ;;  %v2264_v3 = vld [vmem:[%s3035_s7 + $0x68] sm:$0xff]  }
 0x16e   :  { %v454_v8 = vadd.f32 %v453_v6, %v2555_v12  ;;  %v455_v10 = vpop.f32.mrb[61].mxu0 }
 0x16f   :  { %v456_v11 = vadd.f32 %v455_v10, %v2558_v13  ;;  %v457_v14 = vpop.f32.mrb[62].mxu0  ;;  %934 = vmatprep.mubr.bf16.mxu1 %v555_v5  ;;  %v2265_v10 = vld [vmem:[%s3035_s7 + $0x28] sm:$0xff]  }
 0x170   :  { %v458_v15 = vadd.f32 %v457_v14, %v2555_v12  ;;  %v459_v16 = vpop.f32.mrb[63].mxu0  ;;  %935 = vmatmul.mubr.bf16.gmra.mrb[56].mxu1 %v554_v1  ;;  %v522_v18 = vmax.f32 %v454_v8, 0.0  ;;  %v2254_v12 = vld [vmem:[%s3035_s7 + $0x40] sm:$0xff]  }
 0x171   :  { %v460_v17 = vadd.f32 %v459_v16, %v2558_v13  ;;  %v523_v20 = vmax.f32 %v456_v11, 0.0  ;;  %v2255_v13 = vld [vmem:[%s3035_s7] sm:$0xff]   ;;  %2101 = vmatprep.subr.bf16.mxu1 %v2254_v12  ;;  %1989 = vmatprep.subr.bf16.mxu0 %v2254_v12 }
 0x172   :  { %v524_v19 = vmax.f32 %v458_v15, 0.0  ;;  %2109 = vmatpush3.bf16.msra.mxu1 %v2255_v13  ;;  %v2266_v15 = vld [vmem:[%s3035_s7 + $0x70] sm:$0xff]  }
 0x173   :  { %v525_v21 = vmax.f32 %v460_v17, 0.0  ;;  %2102 = vmatprep.subr.bf16.mxu1 %v2256_v34 }
 0x174   :  { %v556_v22 = vpack.c.bf16 %v524_v19, %v522_v18 }
 0x175   :  { %v557_v23 = vpack.c.bf16 %v525_v21, %v523_v20  ;;  %v2267_v21 = vld [vmem:[%s3035_s7 + $0x30] sm:$0xff]  }
 0x176   :  { %2110 = vmatpush3.bf16.msra.mxu1 %v2257_v37 }
 0x177   :  { %944 = vmatprep.mubr.bf16.mxu1 %v557_v23  ;;  %2103 = vmatprep.subr.bf16.mxu1 %v2258_v39 }
 0x178   :  { %945 = vmatmul.mubr.bf16.gmra.mrb[60].mxu1 %v556_v22 }
 0x17a   :  { %2111 = vmatpush3.bf16.msra.mxu1 %v2259_v45 }
 0x17b   :  { %2104 = vmatprep.subr.bf16.mxu1 %v2260_v48 }
 0x17e   :  { %2112 = vmatpush3.bf16.msra.mxu1 %v2261_v54 }
 0x17f   :  { %2105 = vmatprep.subr.bf16.mxu1 %v2262_v57 }
 0x182   :  { %2113 = vmatpush3.bf16.msra.mxu1 %v2263_v63 }
 0x183   :  { %2106 = vmatprep.subr.bf16.mxu1 %v2264_v3 }
 0x186   :  { %2114 = vmatpush3.bf16.msra.mxu1 %v2265_v10 }
 0x187   :  { %2107 = vmatprep.subr.bf16.mxu1 %v2266_v15 }
 0x18a   :  { %2115 = vmatpush3.bf16.msra.mxu1 %v2267_v21 }
 0x1d3   :  { %v796_v27 = vpop.f32.mrb[0].mxu1 }
 0x1d4   :  { %v797_v28 = vadd.f32 %v796_v27, %v2709_v25  ;;  %v798_v29 = vpop.f32.mrb[1].mxu1 }
 0x1d5   :  { %v799_v30 = vadd.f32 %v798_v29, %v2715_v26  ;;  %v800_v31 = vpop.f32.mrb[2].mxu1 }
 0x1d6   :  { %v801_v32 = vadd.f32 %v800_v31, %v2709_v25  ;;  %v802_v33 = vpop.f32.mrb[3].mxu1  ;;  %v955_v35 = vmax.f32 %v797_v28, 0.0 }
 0x1d7   :  { %v803_v36 = vadd.f32 %v802_v33, %v2715_v26  ;;  %v956_v40 = vmax.f32 %v799_v30, 0.0 }
 0x1d8   :  { %v957_v38 = vmax.f32 %v801_v32, 0.0 }
 0x1d9   :  { %v958_v41 = vmax.f32 %v803_v36, 0.0 }
 0x1da   :  { %v1019_v42 = vpack.c.bf16 %v957_v38, %v955_v35 }
 0x1db   :  { %v1020_v43 = vpack.c.bf16 %v958_v41, %v956_v40  ;;  %v806_v44 = vpop.f32.mrb[4].mxu1 }
 0x1dc   :  { %v807_v46 = vadd.f32 %v806_v44, %v2709_v25  ;;  %v808_v47 = vpop.f32.mrb[5].mxu1 }
 0x1dd   :  { %v809_v49 = vadd.f32 %v808_v47, %v2715_v26  ;;  %v810_v50 = vpop.f32.mrb[6].mxu1  ;;  %1287 = vmatprep.mubr.bf16.mxu0 %v1020_v43 }
 0x1de   :  { %v811_v51 = vadd.f32 %v810_v50, %v2709_v25  ;;  %v812_v52 = vpop.f32.mrb[7].mxu1  ;;  %1288 = vmatmul.mubr.bf16.vlgmr.msra.gmra.mrb[64].mxu0 %v1019_v42  ;;  %v959_v55 = vmax.f32 %v807_v46, 0.0 }
 0x1df   :  { %v813_v53 = vadd.f32 %v812_v52, %v2715_v26  ;;  %1990 = vmatpush3.bf16.msra.mxu0 %v2255_v13  ;;  %v960_v58 = vmax.f32 %v809_v49, 0.0 }
 0x1e0   :  { %v961_v56 = vmax.f32 %v811_v51, 0.0  ;;  %1991 = vmatprep.subr.bf16.mxu0 %v2256_v34 }
 0x1e1   :  { %v962_v59 = vmax.f32 %v813_v53, 0.0 }
 0x1e2   :  { %v1021_v60 = vpack.c.bf16 %v961_v56, %v959_v55 }
 0x1e3   :  { %v1022_v61 = vpack.c.bf16 %v962_v59, %v960_v58  ;;  %v816_v62 = vpop.f32.mrb[8].mxu1  ;;  %1992 = vmatpush3.bf16.msra.mxu0 %v2257_v37 }
 0x1e4   :  { %v817_v0 = vadd.f32 %v816_v62, %v2709_v25  ;;  %v818_v2 = vpop.f32.mrb[9].mxu1  ;;  %1993 = vmatprep.subr.bf16.mxu0 %v2258_v39 }
 0x1e5   :  { %v819_v4 = vadd.f32 %v818_v2, %v2715_v26  ;;  %v820_v1 = vpop.f32.mrb[10].mxu1  ;;  %1297 = vmatprep.mubr.bf16.mxu0 %v1022_v61 }
 0x1e6   :  { %v821_v5 = vadd.f32 %v820_v1, %v2709_v25  ;;  %v822_v6 = vpop.f32.mrb[11].mxu1  ;;  %1298 = vmatmul.mubr.bf16.gmra.mrb[68].mxu0 %v1021_v60  ;;  %v963_v11 = vmax.f32 %v817_v0, 0.0 }
 0x1e7   :  { %v823_v8 = vadd.f32 %v822_v6, %v2715_v26  ;;  %1994 = vmatpush3.bf16.msra.mxu0 %v2259_v45  ;;  %v964_v16 = vmax.f32 %v819_v4, 0.0 }
 0x1e8   :  { %v965_v14 = vmax.f32 %v821_v5, 0.0  ;;  %1995 = vmatprep.subr.bf16.mxu0 %v2260_v48 }
 0x1e9   :  { %v966_v17 = vmax.f32 %v823_v8, 0.0 }
 0x1ea   :  { %v1023_v18 = vpack.c.bf16 %v965_v14, %v963_v11 }
 0x1eb   :  { %v1024_v19 = vpack.c.bf16 %v966_v17, %v964_v16  ;;  %v826_v20 = vpop.f32.mrb[12].mxu1  ;;  %1996 = vmatpush3.bf16.msra.mxu0 %v2261_v54 }
 0x1ec   :  { %v827_v22 = vadd.f32 %v826_v20, %v2709_v25  ;;  %v828_v23 = vpop.f32.mrb[13].mxu1  ;;  %1997 = vmatprep.subr.bf16.mxu0 %v2262_v57 }
 0x1ed   :  { %v829_v24 = vadd.f32 %v828_v23, %v2715_v26  ;;  %v830_v12 = vpop.f32.mrb[14].mxu1  ;;  %1307 = vmatprep.mubr.bf16.mxu0 %v1024_v19 }
 0x1ee   :  { %v831_v13 = vadd.f32 %v830_v12, %v2709_v25  ;;  %v832_v27 = vpop.f32.mrb[15].mxu1  ;;  %1308 = vmatmul.mubr.bf16.gmra.mrb[72].mxu0 %v1023_v18  ;;  %v967_v29 = vmax.f32 %v827_v22, 0.0 }
 0x1ef   :  { %v833_v28 = vadd.f32 %v832_v27, %v2715_v26  ;;  %1998 = vmatpush3.bf16.msra.mxu0 %v2263_v63  ;;  %v968_v31 = vmax.f32 %v829_v24, 0.0 }
 0x1f0   :  { %v969_v30 = vmax.f32 %v831_v13, 0.0  ;;  %1999 = vmatprep.subr.bf16.mxu0 %v2264_v3 }
 0x1f1   :  { %v970_v32 = vmax.f32 %v833_v28, 0.0 }
 0x1f2   :  { %v1025_v33 = vpack.c.bf16 %v969_v30, %v967_v29 }
 0x1f3   :  { %v1026_v34 = vpack.c.bf16 %v970_v32, %v968_v31  ;;  %v836_v35 = vpop.f32.mrb[16].mxu1  ;;  %2000 = vmatpush3.bf16.msra.mxu0 %v2265_v10 }
 0x1f4   :  { %v837_v36 = vadd.f32 %v836_v35, %v2709_v25  ;;  %v838_v37 = vpop.f32.mrb[17].mxu1  ;;  %2001 = vmatprep.subr.bf16.mxu0 %v2266_v15 }
 0x1f5   :  { %v839_v38 = vadd.f32 %v838_v37, %v2715_v26  ;;  %v840_v39 = vpop.f32.mrb[18].mxu1  ;;  %1317 = vmatprep.mubr.bf16.mxu0 %v1026_v34 }
 0x1f6   :  { %v841_v40 = vadd.f32 %v840_v39, %v2709_v25  ;;  %v842_v41 = vpop.f32.mrb[19].mxu1  ;;  %1318 = vmatmul.mubr.bf16.gmra.mrb[76].mxu0 %v1025_v33  ;;  %v971_v43 = vmax.f32 %v837_v36, 0.0 }
 0x1f7   :  { %v843_v42 = vadd.f32 %v842_v41, %v2715_v26  ;;  %2002 = vmatpush3.bf16.msra.mxu0 %v2267_v21  ;;  %v972_v45 = vmax.f32 %v839_v38, 0.0 }
 0x1f8   :  { %v973_v44 = vmax.f32 %v841_v40, 0.0 }
 0x1f9   :  { %v974_v46 = vmax.f32 %v843_v42, 0.0 }
 0x1fa   :  { %v1027_v47 = vpack.c.bf16 %v973_v44, %v971_v43 }
 0x1fb   :  { %v1028_v48 = vpack.c.bf16 %v974_v46, %v972_v45  ;;  %v846_v49 = vpop.f32.mrb[20].mxu1 }
 0x1fc   :  { %v847_v50 = vadd.f32 %v846_v49, %v2709_v25  ;;  %v848_v51 = vpop.f32.mrb[21].mxu1 }
 0x1fd   :  { %v849_v52 = vadd.f32 %v848_v51, %v2715_v26  ;;  %v850_v53 = vpop.f32.mrb[22].mxu1  ;;  %1327 = vmatprep.mubr.bf16.mxu0 %v1028_v48 }
 0x1fe   :  { %v851_v54 = vadd.f32 %v850_v53, %v2709_v25  ;;  %v852_v55 = vpop.f32.mrb[23].mxu1  ;;  %1328 = vmatmul.mubr.bf16.gmra.mrb[80].mxu0 %v1027_v47  ;;  %v975_v57 = vmax.f32 %v847_v50, 0.0 }
 0x1ff   :  { %v853_v56 = vadd.f32 %v852_v55, %v2715_v26  ;;  %v976_v59 = vmax.f32 %v849_v52, 0.0 }
 0x200   :  { %v977_v58 = vmax.f32 %v851_v54, 0.0 }
 0x201   :  { %v978_v60 = vmax.f32 %v853_v56, 0.0 }
 0x202   :  { %v1029_v61 = vpack.c.bf16 %v977_v58, %v975_v57 }
 0x203   :  { %v1030_v62 = vpack.c.bf16 %v978_v60, %v976_v59  ;;  %v856_v63 = vpop.f32.mrb[24].mxu1 }
 0x204   :  { %v857_v0 = vadd.f32 %v856_v63, %v2709_v25  ;;  %v858_v2 = vpop.f32.mrb[25].mxu1 }
 0x205   :  { %v859_v3 = vadd.f32 %v858_v2, %v2715_v26  ;;  %v860_v4 = vpop.f32.mrb[26].mxu1  ;;  %1337 = vmatprep.mubr.bf16.mxu0 %v1030_v62 }
 0x206   :  { %v861_v1 = vadd.f32 %v860_v4, %v2709_v25  ;;  %v862_v5 = vpop.f32.mrb[27].mxu1  ;;  %1338 = vmatmul.mubr.bf16.gmra.mrb[84].mxu0 %v1029_v61  ;;  %v979_v8 = vmax.f32 %v857_v0, 0.0 }
 0x207   :  { %v863_v6 = vadd.f32 %v862_v5, %v2715_v26  ;;  %v980_v11 = vmax.f32 %v859_v3, 0.0 }
 0x208   :  { %v981_v10 = vmax.f32 %v861_v1, 0.0 }
 0x209   :  { %v982_v14 = vmax.f32 %v863_v6, 0.0 }
 0x20a   :  { %v1031_v15 = vpack.c.bf16 %v981_v10, %v979_v8 }
 0x20b   :  { %v1032_v16 = vpack.c.bf16 %v982_v14, %v980_v11  ;;  %v866_v17 = vpop.f32.mrb[28].mxu1 }
 0x20c   :  { %v867_v18 = vadd.f32 %v866_v17, %v2709_v25  ;;  %v868_v19 = vpop.f32.mrb[29].mxu1 }
 0x20d   :  { %v869_v20 = vadd.f32 %v868_v19, %v2715_v26  ;;  %v870_v21 = vpop.f32.mrb[30].mxu1  ;;  %1347 = vmatprep.mubr.bf16.mxu0 %v1032_v16 }
 0x20e   :  { %v871_v22 = vadd.f32 %v870_v21, %v2709_v25  ;;  %v872_v23 = vpop.f32.mrb[31].mxu1  ;;  %1348 = vmatmul.mubr.bf16.gmra.mrb[88].mxu0 %v1031_v15  ;;  %v983_v12 = vmax.f32 %v867_v18, 0.0 }
 0x20f   :  { %v873_v24 = vadd.f32 %v872_v23, %v2715_v26  ;;  %v984_v27 = vmax.f32 %v869_v20, 0.0 }
 0x210   :  { %v985_v13 = vmax.f32 %v871_v22, 0.0 }
 0x211   :  { %v986_v28 = vmax.f32 %v873_v24, 0.0 }
 0x212   :  { %v1033_v29 = vpack.c.bf16 %v985_v13, %v983_v12 }
 0x213   :  { %v1034_v30 = vpack.c.bf16 %v986_v28, %v984_v27  ;;  %v876_v31 = vpop.f32.mrb[32].mxu1 }
 0x214   :  { %v877_v32 = vadd.f32 %v876_v31, %v2709_v25  ;;  %v878_v33 = vpop.f32.mrb[33].mxu1 }
 0x215   :  { %v879_v34 = vadd.f32 %v878_v33, %v2715_v26  ;;  %v880_v35 = vpop.f32.mrb[34].mxu1  ;;  %1357 = vmatprep.mubr.bf16.mxu0 %v1034_v30 }
 0x216   :  { %v881_v36 = vadd.f32 %v880_v35, %v2709_v25  ;;  %v882_v37 = vpop.f32.mrb[35].mxu1  ;;  %1358 = vmatmul.mubr.bf16.gmra.mrb[92].mxu0 %v1033_v29  ;;  %v987_v39 = vmax.f32 %v877_v32, 0.0 }
 0x217   :  { %v883_v38 = vadd.f32 %v882_v37, %v2715_v26  ;;  %v988_v41 = vmax.f32 %v879_v34, 0.0  ;;  %v2268_v34 = vld [vmem:[%s3035_s7 + $0x78] sm:$0xff]  }
 0x218   :  { %v989_v40 = vmax.f32 %v881_v36, 0.0  ;;  %v2269_v36 = vld [vmem:[%s3035_s7 + $0x38] sm:$0xff]   ;;  %2003 = vmatprep.subr.bf16.mxu0 %v2268_v34  ;;  %2108 = vmatprep.subr.bf16.mxu1 %v2268_v34 }
 0x219   :  { %v990_v42 = vmax.f32 %v883_v38, 0.0  ;;  %2004 = vmatpush3.bf16.msra.mxu0 %v2269_v36  ;;  %2116 = vmatpush3.bf16.msra.mxu1 %v2269_v36 }
 0x21a   :  { %v1035_v43 = vpack.c.bf16 %v989_v40, %v987_v39 }
 0x21b   :  { %v1036_v44 = vpack.c.bf16 %v990_v42, %v988_v41  ;;  %v886_v45 = vpop.f32.mrb[36].mxu1 }
 0x21c   :  { %v887_v46 = vadd.f32 %v886_v45, %v2709_v25  ;;  %v888_v47 = vpop.f32.mrb[37].mxu1 }
 0x21d   :  { %v889_v48 = vadd.f32 %v888_v47, %v2715_v26  ;;  %v890_v49 = vpop.f32.mrb[38].mxu1  ;;  %1367 = vmatprep.mubr.bf16.mxu0 %v1036_v44 }
 0x21e   :  { %v891_v50 = vadd.f32 %v890_v49, %v2709_v25  ;;  %v892_v51 = vpop.f32.mrb[39].mxu1  ;;  %1368 = vmatmul.mubr.bf16.gmra.mrb[96].mxu0 %v1035_v43  ;;  %v991_v53 = vmax.f32 %v887_v46, 0.0 }
 0x21f   :  { %v893_v52 = vadd.f32 %v892_v51, %v2715_v26  ;;  %v992_v55 = vmax.f32 %v889_v48, 0.0 }
 0x220   :  { %v993_v54 = vmax.f32 %v891_v50, 0.0 }
 0x221   :  { %v994_v56 = vmax.f32 %v893_v52, 0.0 }
 0x222   :  { %v1037_v57 = vpack.c.bf16 %v993_v54, %v991_v53 }
 0x223   :  { %v1038_v58 = vpack.c.bf16 %v994_v56, %v992_v55  ;;  %v896_v59 = vpop.f32.mrb[40].mxu1 }
 0x224   :  { %v897_v60 = vadd.f32 %v896_v59, %v2709_v25  ;;  %v898_v61 = vpop.f32.mrb[41].mxu1 }
 0x225   :  { %v899_v62 = vadd.f32 %v898_v61, %v2715_v26  ;;  %v900_v63 = vpop.f32.mrb[42].mxu1  ;;  %1377 = vmatprep.mubr.bf16.mxu0 %v1038_v58 }
 0x226   :  { %v901_v0 = vadd.f32 %v900_v63, %v2709_v25  ;;  %v902_v2 = vpop.f32.mrb[43].mxu1  ;;  %1378 = vmatmul.mubr.bf16.gmra.mrb[100].mxu0 %v1037_v57  ;;  %v995_v4 = vmax.f32 %v897_v60, 0.0 }
 0x227   :  { %v903_v3 = vadd.f32 %v902_v2, %v2715_v26  ;;  %v996_v5 = vmax.f32 %v899_v62, 0.0 }
 0x228   :  { %v997_v1 = vmax.f32 %v901_v0, 0.0 }
 0x229   :  { %v998_v6 = vmax.f32 %v903_v3, 0.0 }
 0x22a   :  { %v1039_v8 = vpack.c.bf16 %v997_v1, %v995_v4 }
 0x22b   :  { %v1040_v10 = vpack.c.bf16 %v998_v6, %v996_v5  ;;  %v906_v11 = vpop.f32.mrb[44].mxu1 }
 0x22c   :  { %v907_v14 = vadd.f32 %v906_v11, %v2709_v25  ;;  %v908_v15 = vpop.f32.mrb[45].mxu1 }
 0x22d   :  { %v909_v16 = vadd.f32 %v908_v15, %v2715_v26  ;;  %v910_v17 = vpop.f32.mrb[46].mxu1  ;;  %1387 = vmatprep.mubr.bf16.mxu0 %v1040_v10 }
 0x22e   :  { %v911_v18 = vadd.f32 %v910_v17, %v2709_v25  ;;  %v912_v19 = vpop.f32.mrb[47].mxu1  ;;  %1388 = vmatmul.mubr.bf16.gmra.mrb[104].mxu0 %v1039_v8  ;;  %v999_v21 = vmax.f32 %v907_v14, 0.0 }
 0x22f   :  { %v913_v20 = vadd.f32 %v912_v19, %v2715_v26  ;;  %v1000_v23 = vmax.f32 %v909_v16, 0.0 }
 0x230   :  { %v1001_v22 = vmax.f32 %v911_v18, 0.0 }
 0x231   :  { %v1002_v24 = vmax.f32 %v913_v20, 0.0 }
 0x232   :  { %v1041_v12 = vpack.c.bf16 %v1001_v22, %v999_v21 }
 0x233   :  { %v1042_v13 = vpack.c.bf16 %v1002_v24, %v1000_v23  ;;  %v916_v27 = vpop.f32.mrb[48].mxu1 }
 0x234   :  { %v917_v28 = vadd.f32 %v916_v27, %v2709_v25  ;;  %v918_v29 = vpop.f32.mrb[49].mxu1 }
 0x235   :  { %v919_v30 = vadd.f32 %v918_v29, %v2715_v26  ;;  %v920_v31 = vpop.f32.mrb[50].mxu1  ;;  %1397 = vmatprep.mubr.bf16.mxu0 %v1042_v13 }
 0x236   :  { %v921_v32 = vadd.f32 %v920_v31, %v2709_v25  ;;  %v922_v33 = vpop.f32.mrb[51].mxu1  ;;  %1398 = vmatmul.mubr.bf16.gmra.mrb[108].mxu0 %v1041_v12  ;;  %v1003_v37 = vmax.f32 %v917_v28, 0.0  ;;  %v1083_v12 = vld [vmem:[%s3036_s6] sm:$0x3] }
 0x237   :  { %v923_v35 = vadd.f32 %v922_v33, %v2715_v26  ;;  %v1004_v39 = vmax.f32 %v919_v30, 0.0  ;;  %v2827_v13 = vrot.slane %v1083_v12, %v2541_v7 }
 0x238   :  { %v1005_v38 = vmax.f32 %v921_v32, 0.0 }
 0x239   :  { %v1006_v40 = vmax.f32 %v923_v35, 0.0 }
 0x23a   :  { %v1043_v41 = vpack.c.bf16 %v1005_v38, %v1003_v37 }
 0x23b   :  { %v1044_v42 = vpack.c.bf16 %v1006_v40, %v1004_v39  ;;  %v926_v43 = vpop.f32.mrb[52].mxu1 }
 0x23c   :  { %v927_v44 = vadd.f32 %v926_v43, %v2709_v25  ;;  %v928_v45 = vpop.f32.mrb[53].mxu1 }
 0x23d   :  { %v929_v46 = vadd.f32 %v928_v45, %v2715_v26  ;;  %v930_v47 = vpop.f32.mrb[54].mxu1  ;;  %1407 = vmatprep.mubr.bf16.mxu0 %v1044_v42 }
 0x23e   :  { %v931_v48 = vadd.f32 %v930_v47, %v2709_v25  ;;  %v932_v49 = vpop.f32.mrb[55].mxu1  ;;  %1408 = vmatmul.mubr.bf16.gmra.mrb[112].mxu0 %v1043_v41  ;;  %v1007_v51 = vmax.f32 %v927_v44, 0.0 }
 0x23f   :  { %v933_v50 = vadd.f32 %v932_v49, %v2715_v26  ;;  %v1008_v53 = vmax.f32 %v929_v46, 0.0 }
 0x240   :  { %v1009_v52 = vmax.f32 %v931_v48, 0.0 }
 0x241   :  { %v1010_v54 = vmax.f32 %v933_v50, 0.0 }
 0x242   :  { %v1045_v55 = vpack.c.bf16 %v1009_v52, %v1007_v51 }
 0x243   :  { %v1046_v56 = vpack.c.bf16 %v1010_v54, %v1008_v53  ;;  %v936_v57 = vpop.f32.mrb[56].mxu1 }
 0x244   :  { %v937_v58 = vadd.f32 %v936_v57, %v2709_v25  ;;  %v938_v59 = vpop.f32.mrb[57].mxu1 }
 0x245   :  { %v939_v60 = vadd.f32 %v938_v59, %v2715_v26  ;;  %v940_v61 = vpop.f32.mrb[58].mxu1  ;;  %1417 = vmatprep.mubr.bf16.mxu0 %v1046_v56 }
 0x246   :  { %v941_v62 = vadd.f32 %v940_v61, %v2709_v25  ;;  %v942_v63 = vpop.f32.mrb[59].mxu1  ;;  %1418 = vmatmul.mubr.bf16.gmra.mrb[116].mxu0 %v1045_v55  ;;  %v1011_v2 = vmax.f32 %v937_v58, 0.0 }
 0x247   :  { %v943_v0 = vadd.f32 %v942_v63, %v2715_v26  ;;  %v1012_v4 = vmax.f32 %v939_v60, 0.0 }
 0x248   :  { %v1013_v3 = vmax.f32 %v941_v62, 0.0 }
 0x249   :  { %v1014_v1 = vmax.f32 %v943_v0, 0.0 }
 0x24a   :  { %v1047_v5 = vpack.c.bf16 %v1013_v3, %v1011_v2 }
 0x24b   :  { %v1048_v6 = vpack.c.bf16 %v1014_v1, %v1012_v4  ;;  %v946_v8 = vpop.f32.mrb[60].mxu1 }
 0x24c   :  { %v947_v10 = vadd.f32 %v946_v8, %v2709_v25  ;;  %v948_v11 = vpop.f32.mrb[61].mxu1 }
 0x24d   :  { %v949_v14 = vadd.f32 %v948_v11, %v2715_v26  ;;  %v950_v15 = vpop.f32.mrb[62].mxu1  ;;  %1427 = vmatprep.mubr.bf16.mxu0 %v1048_v6 }
 0x24e   :  { %v951_v16 = vadd.f32 %v950_v15, %v2709_v25  ;;  %v952_v17 = vpop.f32.mrb[63].mxu1  ;;  %1428 = vmatmul.mubr.bf16.gmra.mrb[120].mxu0 %v1047_v5  ;;  %v1015_v19 = vmax.f32 %v947_v10, 0.0  ;;  %v2830_v25 = vrot.slane %v1083_v12, %v2546_v9 }
 0x24f   :  { %v953_v18 = vadd.f32 %v952_v17, %v2715_v26  ;;  %v1016_v21 = vmax.f32 %v949_v14, 0.0 }
 0x250   :  { %v1017_v20 = vmax.f32 %v951_v16, 0.0 }
 0x251   :  { %v1018_v22 = vmax.f32 %v953_v18, 0.0 }
 0x252   :  { %v1049_v23 = vpack.c.bf16 %v1017_v20, %v1015_v19 }
 0x253   :  { %v1050_v24 = vpack.c.bf16 %v1018_v22, %v1016_v21 }
 0x255   :  { %1437 = vmatprep.mubr.bf16.mxu0 %v1050_v24 }
 0x256   :  { %1438 = vmatmul.mubr.bf16.gmra.mrb[124].mxu0 %v1049_v23 }
 0x2b1   :  { %v1289_v27 = vpop.f32.mrb[64].mxu0 }
 0x2b2   :  { %v1290_v26 = vadd.f32 %v1289_v27, %v2827_v13  ;;  %v1291_v28 = vpop.f32.mrb[65].mxu0 }
 0x2b3   :  { %v1292_v29 = vadd.f32 %v1291_v28, %v2830_v25  ;;  %v1293_v30 = vpop.f32.mrb[66].mxu0 }
 0x2b4   :  { %v1294_v31 = vadd.f32 %v1293_v30, %v2827_v13  ;;  %v1295_v32 = vpop.f32.mrb[67].mxu0  ;;  %v1448_v34 = vmax.f32 %v1290_v26, 0.0 }
 0x2b5   :  { %v1296_v33 = vadd.f32 %v1295_v32, %v2830_v25  ;;  %v1449_v36 = vmax.f32 %v1292_v29, 0.0 }
 0x2b6   :  { %v1450_v35 = vmax.f32 %v1294_v31, 0.0 }
 0x2b7   :  { %v1451_v7 = vmax.f32 %v1296_v33, 0.0 }
 0x2b8   :  { %v1512_v37 = vpack.c.bf16 %v1450_v35, %v1448_v34 }
 0x2b9   :  { %v1513_v38 = vpack.c.bf16 %v1451_v7, %v1449_v36  ;;  %v1299_v9 = vpop.f32.mrb[68].mxu0 }
 0x2ba   :  { %v1300_v39 = vadd.f32 %v1299_v9, %v2827_v13  ;;  %v1301_v40 = vpop.f32.mrb[69].mxu0 }
 0x2bb   :  { %v1302_v41 = vadd.f32 %v1301_v40, %v2830_v25  ;;  %v1303_v42 = vpop.f32.mrb[70].mxu0  ;;  %1711 = vmatprep.mubr.bf16.mxu0 %v1513_v38 }
 0x2bc   :  { %v1304_v43 = vadd.f32 %v1303_v42, %v2827_v13  ;;  %v1305_v44 = vpop.f32.mrb[71].mxu0  ;;  %1712 = vmatmul.mubr.bf16.vlgmr.msra.gmra.mrb[128].mxu0 %v1512_v37  ;;  %v1452_v46 = vmax.f32 %v1300_v39, 0.0 }
 0x2bd   :  { %v1306_v45 = vadd.f32 %v1305_v44, %v2830_v25  ;;  %v1453_v48 = vmax.f32 %v1302_v41, 0.0 }
 0x2be   :  { %v1454_v47 = vmax.f32 %v1304_v43, 0.0 }
 0x2bf   :  { %v1455_v49 = vmax.f32 %v1306_v45, 0.0 }
 0x2c0   :  { %v1514_v50 = vpack.c.bf16 %v1454_v47, %v1452_v46 }
 0x2c1   :  { %v1515_v51 = vpack.c.bf16 %v1455_v49, %v1453_v48  ;;  %v1309_v52 = vpop.f32.mrb[72].mxu0 }
 0x2c2   :  { %v1310_v53 = vadd.f32 %v1309_v52, %v2827_v13  ;;  %v1311_v54 = vpop.f32.mrb[73].mxu0 }
 0x2c3   :  { %v1312_v55 = vadd.f32 %v1311_v54, %v2830_v25  ;;  %v1313_v56 = vpop.f32.mrb[74].mxu0  ;;  %1719 = vmatprep.mubr.bf16.mxu0 %v1515_v51 }
 0x2c4   :  { %v1314_v57 = vadd.f32 %v1313_v56, %v2827_v13  ;;  %v1315_v58 = vpop.f32.mrb[75].mxu0  ;;  %1720 = vmatmul.mubr.bf16.gmra.mrb[132].mxu0 %v1514_v50  ;;  %v1456_v60 = vmax.f32 %v1310_v53, 0.0 }
 0x2c5   :  { %v1316_v59 = vadd.f32 %v1315_v58, %v2830_v25  ;;  %v1457_v62 = vmax.f32 %v1312_v55, 0.0 }
 0x2c6   :  { %v1458_v61 = vmax.f32 %v1314_v57, 0.0 }
 0x2c7   :  { %v1459_v63 = vmax.f32 %v1316_v59, 0.0 }
 0x2c8   :  { %v1516_v0 = vpack.c.bf16 %v1458_v61, %v1456_v60 }
 0x2c9   :  { %v1517_v2 = vpack.c.bf16 %v1459_v63, %v1457_v62  ;;  %v1319_v3 = vpop.f32.mrb[76].mxu0 }
 0x2ca   :  { %v1320_v4 = vadd.f32 %v1319_v3, %v2827_v13  ;;  %v1321_v1 = vpop.f32.mrb[77].mxu0 }
 0x2cb   :  { %v1322_v5 = vadd.f32 %v1321_v1, %v2830_v25  ;;  %v1323_v6 = vpop.f32.mrb[78].mxu0  ;;  %1727 = vmatprep.mubr.bf16.mxu1 %v1517_v2 }
 0x2cc   :  { %v1324_v8 = vadd.f32 %v1323_v6, %v2827_v13  ;;  %v1325_v10 = vpop.f32.mrb[79].mxu0  ;;  %1728 = vmatmul.mubr.bf16.vlgmr.msra.gmra.mrb[64].mxu1 %v1516_v0  ;;  %v1460_v14 = vmax.f32 %v1320_v4, 0.0 }
 0x2cd   :  { %v1326_v11 = vadd.f32 %v1325_v10, %v2830_v25  ;;  %v1461_v16 = vmax.f32 %v1322_v5, 0.0 }
 0x2ce   :  { %v1462_v15 = vmax.f32 %v1324_v8, 0.0 }
 0x2cf   :  { %v1463_v17 = vmax.f32 %v1326_v11, 0.0 }
 0x2d0   :  { %v1518_v18 = vpack.c.bf16 %v1462_v15, %v1460_v14 }
 0x2d1   :  { %v1519_v19 = vpack.c.bf16 %v1463_v17, %v1461_v16  ;;  %v1329_v20 = vpop.f32.mrb[80].mxu0 }
 0x2d2   :  { %v1330_v21 = vadd.f32 %v1329_v20, %v2827_v13  ;;  %v1331_v22 = vpop.f32.mrb[81].mxu0 }
 0x2d3   :  { %v1332_v23 = vadd.f32 %v1331_v22, %v2830_v25  ;;  %v1333_v24 = vpop.f32.mrb[82].mxu0  ;;  %1735 = vmatprep.mubr.bf16.mxu1 %v1519_v19 }
 0x2d4   :  { %v1334_v12 = vadd.f32 %v1333_v24, %v2827_v13  ;;  %v1335_v27 = vpop.f32.mrb[83].mxu0  ;;  %1736 = vmatmul.mubr.bf16.gmra.mrb[68].mxu1 %v1518_v18  ;;  %v1464_v28 = vmax.f32 %v1330_v21, 0.0 }
 0x2d5   :  { %v1336_v26 = vadd.f32 %v1335_v27, %v2830_v25  ;;  %v1465_v30 = vmax.f32 %v1332_v23, 0.0 }
 0x2d6   :  { %v1466_v29 = vmax.f32 %v1334_v12, 0.0 }
 0x2d7   :  { %v1467_v31 = vmax.f32 %v1336_v26, 0.0 }
 0x2d8   :  { %v1520_v32 = vpack.c.bf16 %v1466_v29, %v1464_v28 }
 0x2d9   :  { %v1521_v33 = vpack.c.bf16 %v1467_v31, %v1465_v30  ;;  %v1339_v34 = vpop.f32.mrb[84].mxu0 }
 0x2da   :  { %v1340_v35 = vadd.f32 %v1339_v34, %v2827_v13  ;;  %v1341_v36 = vpop.f32.mrb[85].mxu0 }
 0x2db   :  { %v1342_v7 = vadd.f32 %v1341_v36, %v2830_v25  ;;  %v1343_v37 = vpop.f32.mrb[86].mxu0  ;;  %1743 = vmatprep.mubr.bf16.mxu1 %v1521_v33 }
 0x2dc   :  { %v1344_v38 = vadd.f32 %v1343_v37, %v2827_v13  ;;  %v1345_v9 = vpop.f32.mrb[87].mxu0  ;;  %1744 = vmatmul.mubr.bf16.gmra.mrb[72].mxu1 %v1520_v32  ;;  %v1468_v40 = vmax.f32 %v1340_v35, 0.0 }
 0x2dd   :  { %v1346_v39 = vadd.f32 %v1345_v9, %v2830_v25  ;;  %v1469_v42 = vmax.f32 %v1342_v7, 0.0 }
 0x2de   :  { %v1470_v41 = vmax.f32 %v1344_v38, 0.0 }
 0x2df   :  { %v1471_v43 = vmax.f32 %v1346_v39, 0.0 }
 0x2e0   :  { %v1522_v44 = vpack.c.bf16 %v1470_v41, %v1468_v40 }
 0x2e1   :  { %v1523_v45 = vpack.c.bf16 %v1471_v43, %v1469_v42  ;;  %v1349_v46 = vpop.f32.mrb[88].mxu0 }
 0x2e2   :  { %v1350_v47 = vadd.f32 %v1349_v46, %v2827_v13  ;;  %v1351_v48 = vpop.f32.mrb[89].mxu0 }
 0x2e3   :  { %v1352_v49 = vadd.f32 %v1351_v48, %v2830_v25  ;;  %v1353_v50 = vpop.f32.mrb[90].mxu0  ;;  %1751 = vmatprep.mubr.bf16.mxu1 %v1523_v45 }
 0x2e4   :  { %v1354_v51 = vadd.f32 %v1353_v50, %v2827_v13  ;;  %v1355_v52 = vpop.f32.mrb[91].mxu0  ;;  %1752 = vmatmul.mubr.bf16.gmra.mrb[76].mxu1 %v1522_v44  ;;  %v1472_v54 = vmax.f32 %v1350_v47, 0.0 }
 0x2e5   :  { %v1356_v53 = vadd.f32 %v1355_v52, %v2830_v25  ;;  %v1473_v56 = vmax.f32 %v1352_v49, 0.0 }
 0x2e6   :  { %v1474_v55 = vmax.f32 %v1354_v51, 0.0 }
 0x2e7   :  { %v1475_v57 = vmax.f32 %v1356_v53, 0.0 }
 0x2e8   :  { %v1524_v58 = vpack.c.bf16 %v1474_v55, %v1472_v54 }
 0x2e9   :  { %v1525_v59 = vpack.c.bf16 %v1475_v57, %v1473_v56  ;;  %v1359_v60 = vpop.f32.mrb[92].mxu0 }
 0x2ea   :  { %v1360_v61 = vadd.f32 %v1359_v60, %v2827_v13  ;;  %v1361_v62 = vpop.f32.mrb[93].mxu0 }
 0x2eb   :  { %v1362_v63 = vadd.f32 %v1361_v62, %v2830_v25  ;;  %v1363_v0 = vpop.f32.mrb[94].mxu0  ;;  %1759 = vmatprep.mubr.bf16.mxu1 %v1525_v59 }
 0x2ec   :  { %v1364_v2 = vadd.f32 %v1363_v0, %v2827_v13  ;;  %v1365_v3 = vpop.f32.mrb[95].mxu0  ;;  %1760 = vmatmul.mubr.bf16.gmra.mrb[80].mxu1 %v1524_v58  ;;  %v1476_v1 = vmax.f32 %v1360_v61, 0.0 }
 0x2ed   :  { %v1366_v4 = vadd.f32 %v1365_v3, %v2830_v25  ;;  %v1477_v6 = vmax.f32 %v1362_v63, 0.0 }
 0x2ee   :  { %v1478_v5 = vmax.f32 %v1364_v2, 0.0 }
 0x2ef   :  { %v1479_v8 = vmax.f32 %v1366_v4, 0.0 }
 0x2f0   :  { %v1526_v10 = vpack.c.bf16 %v1478_v5, %v1476_v1 }
 0x2f1   :  { %v1527_v11 = vpack.c.bf16 %v1479_v8, %v1477_v6  ;;  %v1369_v14 = vpop.f32.mrb[96].mxu0 }
 0x2f2   :  { %v1370_v15 = vadd.f32 %v1369_v14, %v2827_v13  ;;  %v1371_v16 = vpop.f32.mrb[97].mxu0 }
 0x2f3   :  { %v1372_v17 = vadd.f32 %v1371_v16, %v2830_v25  ;;  %v1373_v18 = vpop.f32.mrb[98].mxu0  ;;  %1767 = vmatprep.mubr.bf16.mxu1 %v1527_v11 }
 0x2f4   :  { %v1374_v19 = vadd.f32 %v1373_v18, %v2827_v13  ;;  %v1375_v20 = vpop.f32.mrb[99].mxu0  ;;  %1768 = vmatmul.mubr.bf16.gmra.mrb[84].mxu1 %v1526_v10  ;;  %v1480_v22 = vmax.f32 %v1370_v15, 0.0 }
 0x2f5   :  { %v1376_v21 = vadd.f32 %v1375_v20, %v2830_v25  ;;  %v1481_v24 = vmax.f32 %v1372_v17, 0.0 }
 0x2f6   :  { %v1482_v23 = vmax.f32 %v1374_v19, 0.0 }
 0x2f7   :  { %v1483_v12 = vmax.f32 %v1376_v21, 0.0 }
 0x2f8   :  { %v1528_v27 = vpack.c.bf16 %v1482_v23, %v1480_v22 }
 0x2f9   :  { %v1529_v26 = vpack.c.bf16 %v1483_v12, %v1481_v24  ;;  %v1379_v28 = vpop.f32.mrb[100].mxu0 }
 0x2fa   :  { %v1380_v29 = vadd.f32 %v1379_v28, %v2827_v13  ;;  %v1381_v30 = vpop.f32.mrb[101].mxu0 }
 0x2fb   :  { %v1382_v31 = vadd.f32 %v1381_v30, %v2830_v25  ;;  %v1383_v32 = vpop.f32.mrb[102].mxu0  ;;  %1775 = vmatprep.mubr.bf16.mxu1 %v1529_v26 }
 0x2fc   :  { %v1384_v33 = vadd.f32 %v1383_v32, %v2827_v13  ;;  %v1385_v34 = vpop.f32.mrb[103].mxu0  ;;  %1776 = vmatmul.mubr.bf16.gmra.mrb[88].mxu1 %v1528_v27  ;;  %v1484_v36 = vmax.f32 %v1380_v29, 0.0 }
 0x2fd   :  { %v1386_v35 = vadd.f32 %v1385_v34, %v2830_v25  ;;  %v1485_v37 = vmax.f32 %v1382_v31, 0.0 }
 0x2fe   :  { %v1486_v7 = vmax.f32 %v1384_v33, 0.0 }
 0x2ff   :  { %v1487_v38 = vmax.f32 %v1386_v35, 0.0 }
 0x300   :  { %v1530_v9 = vpack.c.bf16 %v1486_v7, %v1484_v36 }
 0x301   :  { %v1531_v39 = vpack.c.bf16 %v1487_v38, %v1485_v37  ;;  %v1389_v40 = vpop.f32.mrb[104].mxu0 }
 0x302   :  { %v1390_v41 = vadd.f32 %v1389_v40, %v2827_v13  ;;  %v1391_v42 = vpop.f32.mrb[105].mxu0 }
 0x303   :  { %v1392_v43 = vadd.f32 %v1391_v42, %v2830_v25  ;;  %v1393_v44 = vpop.f32.mrb[106].mxu0  ;;  %1783 = vmatprep.mubr.bf16.mxu1 %v1531_v39 }
 0x304   :  { %v1394_v45 = vadd.f32 %v1393_v44, %v2827_v13  ;;  %v1395_v46 = vpop.f32.mrb[107].mxu0  ;;  %1784 = vmatmul.mubr.bf16.gmra.mrb[92].mxu1 %v1530_v9  ;;  %v1488_v48 = vmax.f32 %v1390_v41, 0.0 }
 0x305   :  { %v1396_v47 = vadd.f32 %v1395_v46, %v2830_v25  ;;  %v1489_v50 = vmax.f32 %v1392_v43, 0.0 }
 0x306   :  { %v1490_v49 = vmax.f32 %v1394_v45, 0.0 }
 0x307   :  { %v1491_v51 = vmax.f32 %v1396_v47, 0.0 }
 0x308   :  { %v1532_v52 = vpack.c.bf16 %v1490_v49, %v1488_v48 }
 0x309   :  { %v1533_v53 = vpack.c.bf16 %v1491_v51, %v1489_v50  ;;  %v1399_v54 = vpop.f32.mrb[108].mxu0 }
 0x30a   :  { %v1400_v55 = vadd.f32 %v1399_v54, %v2827_v13  ;;  %v1401_v56 = vpop.f32.mrb[109].mxu0 }
 0x30b   :  { %v1402_v57 = vadd.f32 %v1401_v56, %v2830_v25  ;;  %v1403_v58 = vpop.f32.mrb[110].mxu0  ;;  %1791 = vmatprep.mubr.bf16.mxu1 %v1533_v53 }
 0x30c   :  { %v1404_v59 = vadd.f32 %v1403_v58, %v2827_v13  ;;  %v1405_v60 = vpop.f32.mrb[111].mxu0  ;;  %1792 = vmatmul.mubr.bf16.gmra.mrb[96].mxu1 %v1532_v52  ;;  %v1492_v62 = vmax.f32 %v1400_v55, 0.0 }
 0x30d   :  { %v1406_v61 = vadd.f32 %v1405_v60, %v2830_v25  ;;  %v1493_v0 = vmax.f32 %v1402_v57, 0.0 }
 0x30e   :  { %v1494_v63 = vmax.f32 %v1404_v59, 0.0 }
 0x30f   :  { %v1495_v2 = vmax.f32 %v1406_v61, 0.0 }
 0x310   :  { %v1534_v3 = vpack.c.bf16 %v1494_v63, %v1492_v62  ;;  %v2899_v63 = vld [vmem:[%s3037_s8] ss:$0 sm:$0xff] }
 0x311   :  { %v1535_v4 = vpack.c.bf16 %v1495_v2, %v1493_v0  ;;  %v1409_v1 = vpop.f32.mrb[112].mxu0 }
 0x312   :  { %v1410_v5 = vadd.f32 %v1409_v1, %v2827_v13  ;;  %v1411_v6 = vpop.f32.mrb[113].mxu0 }
 0x313   :  { %v1412_v8 = vadd.f32 %v1411_v6, %v2830_v25  ;;  %v1413_v10 = vpop.f32.mrb[114].mxu0  ;;  %1799 = vmatprep.mubr.bf16.mxu1 %v1535_v4 }
 0x314   :  { %v1414_v11 = vadd.f32 %v1413_v10, %v2827_v13  ;;  %v1415_v14 = vpop.f32.mrb[115].mxu0  ;;  %1800 = vmatmul.mubr.bf16.gmra.mrb[100].mxu1 %v1534_v3  ;;  %v1496_v16 = vmax.f32 %v1410_v5, 0.0 }
 0x315   :  { %v1416_v15 = vadd.f32 %v1415_v14, %v2830_v25  ;;  %v1497_v18 = vmax.f32 %v1412_v8, 0.0 }
 0x316   :  { %v1498_v17 = vmax.f32 %v1414_v11, 0.0 }
 0x317   :  { %v1499_v19 = vmax.f32 %v1416_v15, 0.0 }
 0x318   :  { %v1536_v20 = vpack.c.bf16 %v1498_v17, %v1496_v16 }
 0x319   :  { %v1537_v21 = vpack.c.bf16 %v1499_v19, %v1497_v18  ;;  %v1419_v22 = vpop.f32.mrb[116].mxu0 }
 0x31a   :  { %v1420_v23 = vadd.f32 %v1419_v22, %v2827_v13  ;;  %v1421_v24 = vpop.f32.mrb[117].mxu0 }
 0x31b   :  { %v1422_v12 = vadd.f32 %v1421_v24, %v2830_v25  ;;  %v1423_v27 = vpop.f32.mrb[118].mxu0  ;;  %1807 = vmatprep.mubr.bf16.mxu1 %v1537_v21 }
 0x31c   :  { %v1424_v26 = vadd.f32 %v1423_v27, %v2827_v13  ;;  %v1425_v28 = vpop.f32.mrb[119].mxu0  ;;  %1808 = vmatmul.mubr.bf16.gmra.mrb[104].mxu1 %v1536_v20  ;;  %v1500_v30 = vmax.f32 %v1420_v23, 0.0 }
 0x31d   :  { %v1426_v29 = vadd.f32 %v1425_v28, %v2830_v25  ;;  %v1501_v32 = vmax.f32 %v1422_v12, 0.0 }
 0x31e   :  { %v1502_v31 = vmax.f32 %v1424_v26, 0.0 }
 0x31f   :  { %v1503_v33 = vmax.f32 %v1426_v29, 0.0 }
 0x320   :  { %v1538_v34 = vpack.c.bf16 %v1502_v31, %v1500_v30 }
 0x321   :  { %v1539_v35 = vpack.c.bf16 %v1503_v33, %v1501_v32  ;;  %v1429_v36 = vpop.f32.mrb[120].mxu0 }
 0x322   :  { %v1430_v7 = vadd.f32 %v1429_v36, %v2827_v13  ;;  %v1431_v37 = vpop.f32.mrb[121].mxu0 }
 0x323   :  { %v1432_v38 = vadd.f32 %v1431_v37, %v2830_v25  ;;  %v1433_v9 = vpop.f32.mrb[122].mxu0  ;;  %1815 = vmatprep.mubr.bf16.mxu1 %v1539_v35 }
 0x324   :  { %v1434_v39 = vadd.f32 %v1433_v9, %v2827_v13  ;;  %v1435_v40 = vpop.f32.mrb[123].mxu0  ;;  %1816 = vmatmul.mubr.bf16.gmra.mrb[108].mxu1 %v1538_v34  ;;  %v1504_v42 = vmax.f32 %v1430_v7, 0.0 }
 0x325   :  { %v1436_v41 = vadd.f32 %v1435_v40, %v2830_v25  ;;  %v1505_v44 = vmax.f32 %v1432_v38, 0.0 }
 0x326   :  { %v1506_v43 = vmax.f32 %v1434_v39, 0.0 }
 0x327   :  { %v1507_v45 = vmax.f32 %v1436_v41, 0.0 }
 0x328   :  { %v1540_v46 = vpack.c.bf16 %v1506_v43, %v1504_v42 }
 0x329   :  { %v1541_v47 = vpack.c.bf16 %v1507_v45, %v1505_v44  ;;  %v1439_v48 = vpop.f32.mrb[124].mxu0 }
 0x32a   :  { %v1440_v49 = vadd.f32 %v1439_v48, %v2827_v13  ;;  %v1441_v50 = vpop.f32.mrb[125].mxu0 }
 0x32b   :  { %v1442_v51 = vadd.f32 %v1441_v50, %v2830_v25  ;;  %v1443_v52 = vpop.f32.mrb[126].mxu0  ;;  %1823 = vmatprep.mubr.bf16.mxu1 %v1541_v47 }
 0x32c   :  { %v1444_v53 = vadd.f32 %v1443_v52, %v2827_v13  ;;  %v1445_v54 = vpop.f32.mrb[127].mxu0  ;;  %1824 = vmatmul.mubr.bf16.gmra.mrb[112].mxu1 %v1540_v46  ;;  %v1508_v56 = vmax.f32 %v1440_v49, 0.0 }
 0x32d   :  { %v1446_v55 = vadd.f32 %v1445_v54, %v2830_v25  ;;  %v1509_v58 = vmax.f32 %v1442_v51, 0.0 }
 0x32e   :  { %v1510_v57 = vmax.f32 %v1444_v53, 0.0 }
 0x32f   :  { %v1511_v59 = vmax.f32 %v1446_v55, 0.0 }
 0x330   :  { %v1542_v60 = vpack.c.bf16 %v1510_v57, %v1508_v56 }
 0x331   :  { %v1543_v61 = vpack.c.bf16 %v1511_v59, %v1509_v58 }
 0x333   :  { %1831 = vmatprep.mubr.bf16.mxu1 %v1543_v61 }
 0x334   :  { %1832 = vmatmul.mubr.bf16.gmra.mrb[116].mxu1 %v1542_v60 }
 0x38f   :  { %v2005_v62 = vpop.f32.mrb[128].mxu0 }
 0x390   :  { %v2006_v0 = vpop.f32.mrb[129].mxu0 }
 0x391   :  { %v2007_v13 = vadd.f32 %v2006_v0, %v2005_v62  ;;  %v2008_v2 = vpop.f32.mrb[130].mxu0 }
 0x392   :  { %v2009_v3 = vpop.f32.mrb[131].mxu0 }
 0x393   :  { %v1714_v25 = vadd.f32 %v2007_v13, %v2899_v63  ;;  %v2010_v4 = vadd.f32 %v2009_v3, %v2008_v2 }
 0x395   :  { %1840 = vst [vmem:[%s3038_s9] sm:$0xff] %v1714_v25  ;;  %v1717_v1 = vadd.f32 %v2010_v4, %v2899_v63 }
 0x397   :  { %1841 = vst [vmem:[%s3038_s9 + $0x8] sm:$0xff] %v1717_v1  ;;  %v2011_v5 = vpop.f32.mrb[132].mxu0 }
 0x398   :  { %v2012_v6 = vpop.f32.mrb[133].mxu0 }
 0x399   :  { %v2013_v8 = vadd.f32 %v2012_v6, %v2011_v5  ;;  %v2014_v10 = vpop.f32.mrb[134].mxu0 }
 0x39a   :  { %v2015_v11 = vpop.f32.mrb[135].mxu0 }
 0x39b   :  { %v1722_v14 = vadd.f32 %v2013_v8, %v2899_v63  ;;  %v2016_v15 = vadd.f32 %v2015_v11, %v2014_v10 }
 0x39d   :  { %1842 = vst [vmem:[%s3038_s9 + $0x10] sm:$0xff] %v1722_v14  ;;  %v1725_v16 = vadd.f32 %v2016_v15, %v2899_v63 }
 0x39f   :  { %1843 = vst [vmem:[%s3038_s9 + $0x18] sm:$0xff] %v1725_v16  ;;  %v2017_v17 = vpop.f32.mrb[64].mxu1 }
 0x3a0   :  { %v2018_v18 = vpop.f32.mrb[65].mxu1 }
 0x3a1   :  { %v2019_v19 = vadd.f32 %v2018_v18, %v2017_v17  ;;  %v2020_v20 = vpop.f32.mrb[66].mxu1 }
 0x3a2   :  { %v2021_v21 = vpop.f32.mrb[67].mxu1 }
 0x3a3   :  { %v1730_v22 = vadd.f32 %v2019_v19, %v2899_v63  ;;  %v2022_v23 = vadd.f32 %v2021_v21, %v2020_v20 }
 0x3a5   :  { %1844 = vst [vmem:[%s3038_s9 + $0x20] sm:$0xff] %v1730_v22  ;;  %v1733_v24 = vadd.f32 %v2022_v23, %v2899_v63 }
 0x3a7   :  { %1845 = vst [vmem:[%s3038_s9 + $0x28] sm:$0xff] %v1733_v24  ;;  %v2023_v12 = vpop.f32.mrb[68].mxu1 }
 0x3a8   :  { %v2024_v27 = vpop.f32.mrb[69].mxu1 }
 0x3a9   :  { %v2025_v26 = vadd.f32 %v2024_v27, %v2023_v12  ;;  %v2026_v28 = vpop.f32.mrb[70].mxu1 }
 0x3aa   :  { %v2027_v29 = vpop.f32.mrb[71].mxu1 }
 0x3ab   :  { %v1738_v30 = vadd.f32 %v2025_v26, %v2899_v63  ;;  %v2028_v31 = vadd.f32 %v2027_v29, %v2026_v28 }
 0x3ad   :  { %1846 = vst [vmem:[%s3038_s9 + $0x30] sm:$0xff] %v1738_v30  ;;  %v1741_v32 = vadd.f32 %v2028_v31, %v2899_v63 }
 0x3af   :  { %1847 = vst [vmem:[%s3038_s9 + $0x38] sm:$0xff] %v1741_v32  ;;  %v2029_v33 = vpop.f32.mrb[72].mxu1 }
 0x3b0   :  { %v2030_v34 = vpop.f32.mrb[73].mxu1 }
 0x3b1   :  { %v2031_v35 = vadd.f32 %v2030_v34, %v2029_v33  ;;  %v2032_v36 = vpop.f32.mrb[74].mxu1 }
 0x3b2   :  { %v2033_v7 = vpop.f32.mrb[75].mxu1 }
 0x3b3   :  { %v1746_v37 = vadd.f32 %v2031_v35, %v2899_v63  ;;  %v2034_v38 = vadd.f32 %v2033_v7, %v2032_v36 }
 0x3b5   :  { %1848 = vst [vmem:[%s3038_s9 + $0x40] sm:$0xff] %v1746_v37  ;;  %v1749_v9 = vadd.f32 %v2034_v38, %v2899_v63 }
 0x3b7   :  { %1849 = vst [vmem:[%s3038_s9 + $0x48] sm:$0xff] %v1749_v9  ;;  %v2035_v39 = vpop.f32.mrb[76].mxu1 }
 0x3b8   :  { %v2036_v40 = vpop.f32.mrb[77].mxu1 }
 0x3b9   :  { %v2037_v41 = vadd.f32 %v2036_v40, %v2035_v39  ;;  %v2038_v42 = vpop.f32.mrb[78].mxu1 }
 0x3ba   :  { %v2039_v43 = vpop.f32.mrb[79].mxu1 }
 0x3bb   :  { %v1754_v44 = vadd.f32 %v2037_v41, %v2899_v63  ;;  %v2040_v45 = vadd.f32 %v2039_v43, %v2038_v42 }
 0x3bd   :  { %1850 = vst [vmem:[%s3038_s9 + $0x50] sm:$0xff] %v1754_v44  ;;  %v1757_v46 = vadd.f32 %v2040_v45, %v2899_v63 }
 0x3bf   :  { %1851 = vst [vmem:[%s3038_s9 + $0x58] sm:$0xff] %v1757_v46  ;;  %v2041_v47 = vpop.f32.mrb[80].mxu1 }
 0x3c0   :  { %v2042_v48 = vpop.f32.mrb[81].mxu1 }
 0x3c1   :  { %v2043_v49 = vadd.f32 %v2042_v48, %v2041_v47  ;;  %v2044_v50 = vpop.f32.mrb[82].mxu1 }
 0x3c2   :  { %v2045_v51 = vpop.f32.mrb[83].mxu1 }
 0x3c3   :  { %v1762_v52 = vadd.f32 %v2043_v49, %v2899_v63  ;;  %v2046_v53 = vadd.f32 %v2045_v51, %v2044_v50 }
 0x3c5   :  { %1852 = vst [vmem:[%s3038_s9 + $0x60] sm:$0xff] %v1762_v52  ;;  %v1765_v54 = vadd.f32 %v2046_v53, %v2899_v63 }
 0x3c7   :  { %1853 = vst [vmem:[%s3038_s9 + $0x68] sm:$0xff] %v1765_v54  ;;  %v2047_v55 = vpop.f32.mrb[84].mxu1 }
 0x3c8   :  { %v2048_v56 = vpop.f32.mrb[85].mxu1 }
 0x3c9   :  { %v2049_v57 = vadd.f32 %v2048_v56, %v2047_v55  ;;  %v2050_v58 = vpop.f32.mrb[86].mxu1 }
 0x3ca   :  { %v2051_v59 = vpop.f32.mrb[87].mxu1 }
 0x3cb   :  { %v1770_v60 = vadd.f32 %v2049_v57, %v2899_v63  ;;  %v2052_v61 = vadd.f32 %v2051_v59, %v2050_v58 }
 0x3cd   :  { %1854 = vst [vmem:[%s3038_s9 + $0x70] sm:$0xff] %v1770_v60  ;;  %v1773_v62 = vadd.f32 %v2052_v61, %v2899_v63 }
 0x3cf   :  { %1855 = vst [vmem:[%s3038_s9 + $0x78] sm:$0xff] %v1773_v62  ;;  %v2053_v0 = vpop.f32.mrb[88].mxu1 }
 0x3d0   :  { %v2054_v13 = vpop.f32.mrb[89].mxu1 }
 0x3d1   :  { %v2055_v2 = vadd.f32 %v2054_v13, %v2053_v0  ;;  %v2056_v3 = vpop.f32.mrb[90].mxu1 }
 0x3d2   :  { %v2057_v25 = vpop.f32.mrb[91].mxu1 }
 0x3d3   :  { %v1778_v4 = vadd.f32 %v2055_v2, %v2899_v63  ;;  %v2058_v1 = vadd.f32 %v2057_v25, %v2056_v3 }
 0x3d5   :  { %1856 = vst [vmem:[%s3038_s9 + $0x80] sm:$0xff] %v1778_v4  ;;  %v1781_v5 = vadd.f32 %v2058_v1, %v2899_v63 }
 0x3d7   :  { %1857 = vst [vmem:[%s3038_s9 + $0x88] sm:$0xff] %v1781_v5  ;;  %v2059_v6 = vpop.f32.mrb[92].mxu1 }
 0x3d8   :  { %v2060_v8 = vpop.f32.mrb[93].mxu1 }
 0x3d9   :  { %v2061_v10 = vadd.f32 %v2060_v8, %v2059_v6  ;;  %v2062_v11 = vpop.f32.mrb[94].mxu1 }
 0x3da   :  { %v2063_v14 = vpop.f32.mrb[95].mxu1 }
 0x3db   :  { %v1786_v15 = vadd.f32 %v2061_v10, %v2899_v63  ;;  %v2064_v16 = vadd.f32 %v2063_v14, %v2062_v11 }
 0x3dd   :  { %1858 = vst [vmem:[%s3038_s9 + $0x90] sm:$0xff] %v1786_v15  ;;  %v1789_v17 = vadd.f32 %v2064_v16, %v2899_v63 }
 0x3df   :  { %1859 = vst [vmem:[%s3038_s9 + $0x98] sm:$0xff] %v1789_v17  ;;  %v2065_v18 = vpop.f32.mrb[96].mxu1 }
 0x3e0   :  { %v2066_v19 = vpop.f32.mrb[97].mxu1 }
 0x3e1   :  { %v2067_v20 = vadd.f32 %v2066_v19, %v2065_v18  ;;  %v2068_v21 = vpop.f32.mrb[98].mxu1 }
 0x3e2   :  { %v2069_v22 = vpop.f32.mrb[99].mxu1 }
 0x3e3   :  { %v1794_v23 = vadd.f32 %v2067_v20, %v2899_v63  ;;  %v2070_v24 = vadd.f32 %v2069_v22, %v2068_v21 }
 0x3e5   :  { %1860 = vst [vmem:[%s3038_s9 + $0xa0] sm:$0xff] %v1794_v23  ;;  %v1797_v12 = vadd.f32 %v2070_v24, %v2899_v63 }
 0x3e7   :  { %1861 = vst [vmem:[%s3038_s9 + $0xa8] sm:$0xff] %v1797_v12  ;;  %v2071_v27 = vpop.f32.mrb[100].mxu1 }
 0x3e8   :  { %v2072_v26 = vpop.f32.mrb[101].mxu1 }
 0x3e9   :  { %v2073_v28 = vadd.f32 %v2072_v26, %v2071_v27  ;;  %v2074_v29 = vpop.f32.mrb[102].mxu1 }
 0x3ea   :  { %v2075_v30 = vpop.f32.mrb[103].mxu1 }
 0x3eb   :  { %v1802_v31 = vadd.f32 %v2073_v28, %v2899_v63  ;;  %v2076_v32 = vadd.f32 %v2075_v30, %v2074_v29 }
 0x3ed   :  { %1862 = vst [vmem:[%s3038_s9 + $0xb0] sm:$0xff] %v1802_v31  ;;  %v1805_v33 = vadd.f32 %v2076_v32, %v2899_v63 }
 0x3ef   :  { %1863 = vst [vmem:[%s3038_s9 + $0xb8] sm:$0xff] %v1805_v33  ;;  %v2077_v34 = vpop.f32.mrb[104].mxu1 }
 0x3f0   :  { %v2078_v35 = vpop.f32.mrb[105].mxu1 }
 0x3f1   :  { %v2079_v36 = vadd.f32 %v2078_v35, %v2077_v34  ;;  %v2080_v7 = vpop.f32.mrb[106].mxu1 }
 0x3f2   :  { %v2081_v37 = vpop.f32.mrb[107].mxu1 }
 0x3f3   :  { %v1810_v38 = vadd.f32 %v2079_v36, %v2899_v63  ;;  %v2082_v9 = vadd.f32 %v2081_v37, %v2080_v7 }
 0x3f5   :  { %1864 = vst [vmem:[%s3038_s9 + $0xc0] sm:$0xff] %v1810_v38  ;;  %v1813_v39 = vadd.f32 %v2082_v9, %v2899_v63 }
 0x3f7   :  { %1865 = vst [vmem:[%s3038_s9 + $0xc8] sm:$0xff] %v1813_v39  ;;  %v2083_v40 = vpop.f32.mrb[108].mxu1 }
 0x3f8   :  { %v2084_v41 = vpop.f32.mrb[109].mxu1 }
 0x3f9   :  { %v2085_v42 = vadd.f32 %v2084_v41, %v2083_v40  ;;  %v2086_v43 = vpop.f32.mrb[110].mxu1 }
 0x3fa   :  { %v2087_v44 = vpop.f32.mrb[111].mxu1 }
 0x3fb   :  { %v1818_v45 = vadd.f32 %v2085_v42, %v2899_v63  ;;  %v2088_v46 = vadd.f32 %v2087_v44, %v2086_v43 }
 0x3fd   :  { %1866 = vst [vmem:[%s3038_s9 + $0xd0] sm:$0xff] %v1818_v45  ;;  %v1821_v47 = vadd.f32 %v2088_v46, %v2899_v63 }
 0x3ff   :  { %1867 = vst [vmem:[%s3038_s9 + $0xd8] sm:$0xff] %v1821_v47  ;;  %v2089_v48 = vpop.f32.mrb[112].mxu1 }
 0x400   :  { %v2090_v49 = vpop.f32.mrb[113].mxu1 }
 0x401   :  { %v2091_v50 = vadd.f32 %v2090_v49, %v2089_v48  ;;  %v2092_v51 = vpop.f32.mrb[114].mxu1 }
 0x402   :  { %v2093_v52 = vpop.f32.mrb[115].mxu1 }
 0x403   :  { %v1826_v53 = vadd.f32 %v2091_v50, %v2899_v63  ;;  %v2094_v54 = vadd.f32 %v2093_v52, %v2092_v51 }
 0x405   :  { %1868 = vst [vmem:[%s3038_s9 + $0xe0] sm:$0xff] %v1826_v53  ;;  %v1829_v55 = vadd.f32 %v2094_v54, %v2899_v63 }
 0x407   :  { %1869 = vst [vmem:[%s3038_s9 + $0xe8] sm:$0xff] %v1829_v55  ;;  %v2095_v56 = vpop.f32.mrb[116].mxu1 }
 0x408   :  { %v2096_v57 = vpop.f32.mrb[117].mxu1 }
 0x409   :  { %v2097_v58 = vadd.f32 %v2096_v57, %v2095_v56  ;;  %v2098_v59 = vpop.f32.mrb[118].mxu1 }
 0x40a   :  { %v2099_v60 = vpop.f32.mrb[119].mxu1 }
 0x40b   :  { %v1834_v61 = vadd.f32 %v2097_v58, %v2899_v63  ;;  %v2100_v62 = vadd.f32 %v2099_v60, %v2098_v59 }
 0x40d   :  { %1870 = vst [vmem:[%s3038_s9 + $0xf0] sm:$0xff] %v1834_v61  ;;  %v1837_v0 = vadd.f32 %v2100_v62, %v2899_v63 }
 0x40f   :  { %1871 = vst [vmem:[%s3038_s9 + $0xf8] sm:$0xff] %v1837_v0 }

</bundles_post_ra>
